<compile_context>
chip_gen: v7x
topology: tpu7x:2x2x1
jax: 0.10.0
libtpu: 0.0.40
codegen_flags: <defaults>
</compile_context>

<pallas_src>
import jax
import jax.numpy as jnp
import numpy as np
from jax import lax
from jax.experimental import pallas as pl
from jax.experimental.pallas import tpu as pltpu

_LANES = 128
_SUBLANES = 8


def _round_up(x, m):
    return (x + m - 1) // m * m


def _vmem_capacity_bytes():
    """Per-TensorCore VMEM (128 MiB v5e/v6e, 64 MiB v7x); conservative default."""
    try:
        cap = int(pltpu.get_tpu_info().vmem_capacity_bytes)
        if cap > 0:
            return cap
    except Exception:
        pass
    return 64 * 1024 * 1024


def _choose_tile_rows(T, per_row_bytes, resident_bytes, vmem_cap, tile_rows):
    """Pick TB (multiple of 128): big tiles amortize the ~0.35us/step overhead,
    balanced tiles avoid padding blow-up, and >=2 tiles once T >= 256 so the
    parallel grid axis spans both TensorCores on v7x."""
    if tile_rows is not None:
        assert tile_rows % _LANES == 0, "tile_rows must be a multiple of 128"
        return int(tile_rows)
    budget = int(0.70 * vmem_cap) - resident_bytes - (4 << 20)
    budget = max(budget, 2 << 20)
    tb_cap = max(_LANES, min(4096, budget // per_row_bytes // _LANES * _LANES))
    min_tiles = 2 if T >= 2 * _LANES else 1
    num_tiles = max(min_tiles, -(-T // tb_cap))
    tb = _round_up(-(-T // num_tiles), _LANES)
    return max(_LANES, min(tb, tb_cap))


def _fused_triplet_kernel(m_ref, idx_ref, emb3_ref, out_ref):
    """One grid step == TB triplets, gathered in-kernel from the VMEM-resident
    bf16x3 embeddings table via +/-1 selection matmuls on the MXU.

    m_ref    : (2,) f32 SMEM            -- (margin1, margin2)
    idx_ref  : (TB, 4) int32            -- (anchor, positive, related, negative)
    emb3_ref : (3*N_pad, D_pad) bf16    -- [hi; mid; lo] bf16 split of the table
    out_ref  : (1, TB//128, 128) f32    -- per-triplet losses, lane-dense
    """
    tb = idx_ref.shape[0]
    n3, d_pad = emb3_ref.shape
    n_pad = n3 // 3
    tbh = out_ref.shape[1]

    idx = idx_ref[...]                                        # (TB, 4) int32
    col = lax.broadcasted_iota(jnp.int32, (tb, n3), 1)

    def one_hot3(c):
        # 1.0 where (col mod N_pad) == triplets[:, c]; replicated over pieces.
        i = idx[:, c:c + 1]                                   # (TB, 1)
        m = (col == i) | (col == i + n_pad) | (col == i + 2 * n_pad)
        return jnp.where(m, 1.0, 0.0)                         # (TB, 3*N_pad) f32

    oh_a = one_hot3(0)
    oh_p = one_hot3(1)
    oh_r = one_hot3(2)
    oh_n = one_hot3(3)
    # {-1, 0, +1} selection rows are exact in bf16; products & accumulation
    # happen in f32, so (sel @ [hi;mid;lo]) == a - x to ~f32 precision.
    s_ap = (oh_a - oh_p).astype(jnp.bfloat16)
    s_ar = (oh_a - oh_r).astype(jnp.bfloat16)
    s_an = (oh_a - oh_n).astype(jnp.bfloat16)

    emb3 = emb3_ref[...]
    d_ap = jnp.dot(s_ap, emb3, preferred_element_type=jnp.float32)   # a - p
    d_ar = jnp.dot(s_ar, emb3, preferred_element_type=jnp.float32)   # a - r
    d_an = jnp.dot(s_an, emb3, preferred_element_type=jnp.float32)   # a - n

    # Free major-dim split (TB, D) -> (TB//128, 128, D); reduce over D (lanes).
    d_ap = d_ap.reshape(tbh, _LANES, d_pad)
    d_ar = d_ar.reshape(tbh, _LANES, d_pad)
    d_an = d_an.reshape(tbh, _LANES, d_pad)
    ap = jnp.sum(d_ap * d_ap, axis=-1)                        # (TB//128, 128)
    ar = jnp.sum(d_ar * d_ar, axis=-1)
    an = jnp.sum(d_an * d_an, axis=-1)

    m1 = m_ref[0]
    m2 = m_ref[1]
    loss = jnp.maximum(ap - ar + m1, 0.0) + jnp.maximum(ar - an + m2, 0.0)
    out_ref[...] = loss[None]                                 # (1, TB//128, 128)


def _gathered_tile_kernel(m_ref, a_ref, p_ref, r_ref, n_ref, out_ref):
    """Fallback when the table does not fit VMEM: operands pre-gathered in the
    wrapper; one grid step == TB triplets of (TB, D) rows."""
    tbh = out_ref.shape[1]
    d = a_ref.shape[-1]
    a = a_ref[...].reshape(tbh, _LANES, d).astype(jnp.float32)
    p = p_ref[...].reshape(tbh, _LANES, d).astype(jnp.float32)
    r = r_ref[...].reshape(tbh, _LANES, d).astype(jnp.float32)
    n = n_ref[...].reshape(tbh, _LANES, d).astype(jnp.float32)
    d_ap = a - p
    d_ar = a - r
    d_an = a - n
    ap = jnp.sum(d_ap * d_ap, axis=-1)
    ar = jnp.sum(d_ar * d_ar, axis=-1)
    an = jnp.sum(d_an * d_an, axis=-1)
    m1 = m_ref[0]
    m2 = m_ref[1]
    loss = jnp.maximum(ap - ar + m1, 0.0) + jnp.maximum(ar - an + m2, 0.0)
    out_ref[...] = loss[None]


def online_triplet_loss(embeddings, triplets, margin1, margin2,
                        tile_rows=None, force_gather_fallback=False):
    """Pallas implementation of OnlineTripletLoss.forward (given triplets).

    embeddings: (N, D) float32
    triplets  : (T, 4) int32, columns = (anchor, positive, related, negative)
    returns   : (mean_loss: f32 scalar, num_triplets: int)
    """
    N, D = embeddings.shape
    T = int(triplets.shape[0])
    if T == 0:
        # torch: mean over an empty tensor is NaN; len(triplets) == 0.
        return jnp.array(jnp.nan, dtype=jnp.float32), 0

    vmem_cap = _vmem_capacity_bytes()
    margins = jnp.asarray([margin1, margin2], dtype=jnp.float32)
    tri = triplets.astype(jnp.int32)

    n_pad = _round_up(N, _SUBLANES)
    d_pad = _round_up(D, _LANES)
    table_bytes = 2 * (3 * n_pad * d_pad * 2)             # bf16x3 table, 2x-buffered
    per_row_fused = 20 * d_pad + 16 * 3 * n_pad + 64      # diffs + one-hots + idx/out
    use_fused = (not force_gather_fallback) and (
        table_bytes + _LANES * per_row_fused + (8 << 20) <= int(0.75 * vmem_cap))

    if use_fused:
        per_row, resident = per_row_fused, table_bytes
    else:
        per_row, resident = 56 * D, 0                     # 4 gathered operands (2x buf)
    TB = _choose_tile_rows(T, per_row, resident, vmem_cap, tile_rows)
    T_pad = _round_up(T, TB)
    num_tiles = T_pad // TB
    if T_pad != T:
        tri = jnp.pad(tri, ((0, T_pad - T), (0, 0)))      # pad with row 0 (valid)

    vmem_limit = max(32 << 20,
                     min(resident + TB * per_row + (8 << 20), int(0.85 * vmem_cap)))
    cparams = pltpu.CompilerParams(dimension_semantics=("parallel",),
                                   vmem_limit_bytes=int(vmem_limit))
    smem_spec = pl.BlockSpec(memory_space=pltpu.MemorySpace.SMEM)
    out_spec = pl.BlockSpec((1, TB // _LANES, _LANES), lambda t: (t, 0, 0))
    out_shape = jax.ShapeDtypeStruct((num_tiles, TB // _LANES, _LANES), jnp.float32)

    if use_fused:
        # bf16x3 split of the zero-padded table, stacked along rows (done once,
        # tiny vs per-triplet traffic): exact f32 reconstruction in the MXU acc.
        emb_p = jnp.pad(embeddings.astype(jnp.float32),
                        ((0, n_pad - N), (0, d_pad - D)))
        e_hi = emb_p.astype(jnp.bfloat16)
        res1 = emb_p - e_hi.astype(jnp.float32)
        e_mid = res1.astype(jnp.bfloat16)
        e_lo = (res1 - e_mid.astype(jnp.float32)).astype(jnp.bfloat16)
        emb3 = jnp.concatenate([e_hi, e_mid, e_lo], axis=0)   # (3*n_pad, d_pad)

        per_row_losses = pl.pallas_call(
            _fused_triplet_kernel,
            out_shape=out_shape,
            grid_spec=pl.GridSpec(
                grid=(num_tiles,),
                in_specs=[smem_spec,
                          pl.BlockSpec((TB, 4), lambda t: (t, 0)),
                          pl.BlockSpec((3 * n_pad, d_pad), lambda t: (0, 0))],
                out_specs=out_spec),
            compiler_params=cparams,
        )(margins, tri, emb3)
    else:
        # TODO(synk): for tables far larger than VMEM, a page-in loop over the
        # table inside the kernel would avoid these materialized gathers too.
        a = jnp.take(embeddings, tri[:, 0], axis=0)
        p = jnp.take(embeddings, tri[:, 1], axis=0)
        r = jnp.take(embeddings, tri[:, 2], axis=0)
        n = jnp.take(embeddings, tri[:, 3], axis=0)
        row_spec = pl.BlockSpec((TB, D), lambda t: (t, 0))
        per_row_losses = pl.pallas_call(
            _gathered_tile_kernel,
            out_shape=out_shape,
            grid_spec=pl.GridSpec(
                grid=(num_tiles,),
                in_specs=[smem_spec, row_spec, row_spec, row_spec, row_spec],
                out_specs=out_spec),
            compiler_params=cparams,
        )(margins, a, p, r, n)

    # Drop padded rows; finish the mean (and its masking) outside the kernel.
    losses = per_row_losses.reshape(-1)[:T]
    mean_loss = losses.sum() * (1.0 / T)
    return mean_loss, T


def all_pairs_triplet_selector(labels):
    """Deterministic stand-in for triplet_selector.get_triplets.

    For each ordered same-class pair (anchor, positive): related = first
    sample of the next class, negative = first sample of the class after that.
    Returns an int32 array of shape (T, 4).
    """
    labels = np.asarray(labels)
    n_classes = int(labels.max()) + 1
    by_class = [np.nonzero(labels == c)[0] for c in range(n_classes)]
    trips = []
    for c in range(n_classes):
        rel = int(by_class[(c + 1) % n_classes][0])
        neg = int(by_class[(c + 2) % n_classes][0])
        idxs = by_class[c]
        for a in idxs:
            for p in idxs:
                if p == a:
                    continue
                trips.append((int(a), int(p), rel, neg))
    return np.array(trips, dtype=np.int32).reshape(-1, 4)


def reference_loss(embeddings, triplets, margin1, margin2):
    a = embeddings[triplets[:, 0]]
    p = embeddings[triplets[:, 1]]
    r = embeddings[triplets[:, 2]]
    n = embeddings[triplets[:, 3]]
    ap = jnp.sum((a - p) ** 2, axis=1)
    ar = jnp.sum((a - r) ** 2, axis=1)
    an = jnp.sum((a - n) ** 2, axis=1)
    losses = (jnp.maximum(ap - ar + margin1, 0.0)
              + jnp.maximum(ar - an + margin2, 0.0))
    return losses.mean()


if __name__ == "__main__":
    margin1, margin2 = 0.2, 0.4
    key = jax.random.PRNGKey(0)
    k1, k2, k3 = jax.random.split(key, 3)

    # Case 1: tiny -- one tile; T=8 < TB=128 exercises the padding/mask path.
    N1, D1 = 8, 128
    emb_a = jax.random.normal(k1, (N1, D1), dtype=jnp.float32)
    labels1 = np.array([0, 0, 1, 1, 2, 2, 3, 3], dtype=np.int32)
    trips1 = jnp.asarray(all_pairs_triplet_selector(labels1))        # (8, 4)
    loss1, t1 = online_triplet_loss(emb_a, trips1, margin1, margin2)
    loss1 = jax.block_until_ready(loss1)
    ref1 = reference_loss(emb_a, trips1, margin1, margin2)
    np.testing.assert_allclose(np.asarray(loss1), np.asarray(ref1),
                               rtol=1e-4, atol=1e-4)
    assert t1 == int(trips1.shape[0])

    # Case 2: multi-tile fused path -- forced TB=128, T=224 spans 2 tiles.
    N2, D2 = 32, 256
    emb_b = jax.random.normal(k2, (N2, D2), dtype=jnp.float32)
    labels2 = np.repeat(np.arange(4, dtype=np.int32), 8)
    trips2 = jnp.asarray(all_pairs_triplet_selector(labels2))        # (224, 4)
    loss2, t2 = online_triplet_loss(emb_b, trips2, margin1, margin2,
                                    tile_rows=128)
    loss2 = jax.block_until_ready(loss2)
    ref2 = reference_loss(emb_b, trips2, margin1, margin2)
    np.testing.assert_allclose(np.asarray(loss2), np.asarray(ref2),
                               rtol=1e-4, atol=1e-4)
    assert t2 == int(trips2.shape[0])

    # Case 3: ragged shapes -- N not a multiple of 8, D not a multiple of 128
    # (exercises the zero-padded table / D padding in the fused path).
    N3, D3 = 10, 96
    emb_c = jax.random.normal(k3, (N3, D3), dtype=jnp.float32)
    labels3 = np.array([0, 0, 0, 1, 1, 1, 2, 2, 3, 3], dtype=np.int32)
    trips3 = jnp.asarray(all_pairs_triplet_selector(labels3))        # (16, 4)
    loss3, t3 = online_triplet_loss(emb_c, trips3, margin1, margin2)
    loss3 = jax.block_until_ready(loss3)
    ref3 = reference_loss(emb_c, trips3, margin1, margin2)
    np.testing.assert_allclose(np.asarray(loss3), np.asarray(ref3),
                               rtol=1e-4, atol=1e-4)
    assert t3 == int(trips3.shape[0])

    # Case 4: force the gather fallback path (as if the table were too big).
    loss4, _ = online_triplet_loss(emb_b, trips2, margin1, margin2,
                                   force_gather_fallback=True)
    loss4 = jax.block_until_ready(loss4)
    np.testing.assert_allclose(np.asarray(loss4), np.asarray(ref2),
                               rtol=1e-5, atol=1e-5)

    print("KERNEL_OK")
</pallas_src>

<mosaic_0001>
module attributes {stable_mosaic.version = 11 : i64} {
  func.func @_fused_triplet_kernel(%arg0: i32, %arg1: memref<2xf32, #tpu.memory_space<smem>>, %arg2: memref<128x4xi32, #tpu.memory_space<vmem>>, %arg3: memref<24x128xbf16, #tpu.memory_space<vmem>>, %arg4: memref<1x1x128xf32, #tpu.memory_space<vmem>>) attributes {dimension_semantics = [#tpu.dimension_semantics<parallel>], iteration_bounds = array<i64: 1>, scalar_prefetch = 0 : i64, scratch_operands = 0 : i64, tpu.core_type = #tpu.core_type<tc>, window_params = [{transform_indices = @transform_0, window_bounds = array<i64: 2>}, {transform_indices = @transform_1, window_bounds = array<i64: 128, 4>}, {pipeline_mode = #tpu.pipeline_mode<synchronous>, transform_indices = @transform_2, window_bounds = array<i64: 24, 128>}, {transform_indices = @transform_3, window_bounds = array<i64: 1, 1, 128>}]} {
    %c0 = arith.constant 0 : index
    %c0_0 = arith.constant 0 : index
    %0 = vector.load %arg2[%c0, %c0_0] : memref<128x4xi32, #tpu.memory_space<vmem>>, vector<128x4xi32>
    %1 = tpu.iota {dimensions = array<i32: 1>} : vector<128x24xi32>
    %2 = vector.extract_strided_slice %0 {offsets = [0, 0], sizes = [128, 1], strides = [1, 1]} : vector<128x4xi32> to vector<128x1xi32>
    %3 = vector.broadcast %2 : vector<128x1xi32> to vector<128x24xi32>
    %4 = arith.cmpi eq, %1, %3 : vector<128x24xi32>
    %c8_i32 = arith.constant 8 : i32
    %5 = vector.broadcast %c8_i32 : i32 to vector<128x1xi32>
    %6 = arith.addi %2, %5 : vector<128x1xi32>
    %7 = vector.broadcast %6 : vector<128x1xi32> to vector<128x24xi32>
    %8 = arith.cmpi eq, %1, %7 : vector<128x24xi32>
    %9 = arith.ori %4, %8 : vector<128x24xi1>
    %c16_i32 = arith.constant 16 : i32
    %10 = vector.broadcast %c16_i32 : i32 to vector<128x1xi32>
    %11 = arith.addi %2, %10 : vector<128x1xi32>
    %12 = vector.broadcast %11 : vector<128x1xi32> to vector<128x24xi32>
    %13 = arith.cmpi eq, %1, %12 : vector<128x24xi32>
    %14 = arith.ori %9, %13 : vector<128x24xi1>
    %cst = arith.constant 1.000000e+00 : f32
    %cst_1 = arith.constant 0.000000e+00 : f32
    %15 = vector.broadcast %cst : f32 to vector<128x24xf32>
    %16 = vector.broadcast %cst_1 : f32 to vector<128x24xf32>
    %17 = arith.select %14, %15, %16 : vector<128x24xi1>, vector<128x24xf32>
    %18 = vector.extract_strided_slice %0 {offsets = [0, 1], sizes = [128, 1], strides = [1, 1]} : vector<128x4xi32> to vector<128x1xi32>
    %19 = vector.broadcast %18 : vector<128x1xi32> to vector<128x24xi32>
    %20 = arith.cmpi eq, %1, %19 : vector<128x24xi32>
    %c8_i32_2 = arith.constant 8 : i32
    %21 = vector.broadcast %c8_i32_2 : i32 to vector<128x1xi32>
    %22 = arith.addi %18, %21 : vector<128x1xi32>
    %23 = vector.broadcast %22 : vector<128x1xi32> to vector<128x24xi32>
    %24 = arith.cmpi eq, %1, %23 : vector<128x24xi32>
    %25 = arith.ori %20, %24 : vector<128x24xi1>
    %c16_i32_3 = arith.constant 16 : i32
    %26 = vector.broadcast %c16_i32_3 : i32 to vector<128x1xi32>
    %27 = arith.addi %18, %26 : vector<128x1xi32>
    %28 = vector.broadcast %27 : vector<128x1xi32> to vector<128x24xi32>
    %29 = arith.cmpi eq, %1, %28 : vector<128x24xi32>
    %30 = arith.ori %25, %29 : vector<128x24xi1>
    %cst_4 = arith.constant 1.000000e+00 : f32
    %cst_5 = arith.constant 0.000000e+00 : f32
    %31 = vector.broadcast %cst_4 : f32 to vector<128x24xf32>
    %32 = vector.broadcast %cst_5 : f32 to vector<128x24xf32>
    %33 = arith.select %30, %31, %32 : vector<128x24xi1>, vector<128x24xf32>
    %34 = vector.extract_strided_slice %0 {offsets = [0, 2], sizes = [128, 1], strides = [1, 1]} : vector<128x4xi32> to vector<128x1xi32>
    %35 = vector.broadcast %34 : vector<128x1xi32> to vector<128x24xi32>
    %36 = arith.cmpi eq, %1, %35 : vector<128x24xi32>
    %c8_i32_6 = arith.constant 8 : i32
    %37 = vector.broadcast %c8_i32_6 : i32 to vector<128x1xi32>
    %38 = arith.addi %34, %37 : vector<128x1xi32>
    %39 = vector.broadcast %38 : vector<128x1xi32> to vector<128x24xi32>
    %40 = arith.cmpi eq, %1, %39 : vector<128x24xi32>
    %41 = arith.ori %36, %40 : vector<128x24xi1>
    %c16_i32_7 = arith.constant 16 : i32
    %42 = vector.broadcast %c16_i32_7 : i32 to vector<128x1xi32>
    %43 = arith.addi %34, %42 : vector<128x1xi32>
    %44 = vector.broadcast %43 : vector<128x1xi32> to vector<128x24xi32>
    %45 = arith.cmpi eq, %1, %44 : vector<128x24xi32>
    %46 = arith.ori %41, %45 : vector<128x24xi1>
    %cst_8 = arith.constant 1.000000e+00 : f32
    %cst_9 = arith.constant 0.000000e+00 : f32
    %47 = vector.broadcast %cst_8 : f32 to vector<128x24xf32>
    %48 = vector.broadcast %cst_9 : f32 to vector<128x24xf32>
    %49 = arith.select %46, %47, %48 : vector<128x24xi1>, vector<128x24xf32>
    %50 = vector.extract_strided_slice %0 {offsets = [0, 3], sizes = [128, 1], strides = [1, 1]} : vector<128x4xi32> to vector<128x1xi32>
    %51 = vector.broadcast %50 : vector<128x1xi32> to vector<128x24xi32>
    %52 = arith.cmpi eq, %1, %51 : vector<128x24xi32>
    %c8_i32_10 = arith.constant 8 : i32
    %53 = vector.broadcast %c8_i32_10 : i32 to vector<128x1xi32>
    %54 = arith.addi %50, %53 : vector<128x1xi32>
    %55 = vector.broadcast %54 : vector<128x1xi32> to vector<128x24xi32>
    %56 = arith.cmpi eq, %1, %55 : vector<128x24xi32>
    %57 = arith.ori %52, %56 : vector<128x24xi1>
    %c16_i32_11 = arith.constant 16 : i32
    %58 = vector.broadcast %c16_i32_11 : i32 to vector<128x1xi32>
    %59 = arith.addi %50, %58 : vector<128x1xi32>
    %60 = vector.broadcast %59 : vector<128x1xi32> to vector<128x24xi32>
    %61 = arith.cmpi eq, %1, %60 : vector<128x24xi32>
    %62 = arith.ori %57, %61 : vector<128x24xi1>
    %cst_12 = arith.constant 1.000000e+00 : f32
    %cst_13 = arith.constant 0.000000e+00 : f32
    %63 = vector.broadcast %cst_12 : f32 to vector<128x24xf32>
    %64 = vector.broadcast %cst_13 : f32 to vector<128x24xf32>
    %65 = arith.select %62, %63, %64 : vector<128x24xi1>, vector<128x24xf32>
    %66 = arith.subf %17, %33 : vector<128x24xf32>
    %67 = arith.truncf %66 : vector<128x24xf32> to vector<128x24xbf16>
    %68 = arith.subf %17, %49 : vector<128x24xf32>
    %69 = arith.truncf %68 : vector<128x24xf32> to vector<128x24xbf16>
    %70 = arith.subf %17, %65 : vector<128x24xf32>
    %71 = arith.truncf %70 : vector<128x24xf32> to vector<128x24xbf16>
    %c0_14 = arith.constant 0 : index
    %c0_15 = arith.constant 0 : index
    %72 = vector.load %arg3[%c0_14, %c0_15] : memref<24x128xbf16, #tpu.memory_space<vmem>>, vector<24x128xbf16>
    %cst_16 = arith.constant dense<0.000000e+00> : vector<128x128xf32>
    %73 = tpu.matmul %67, %72, %cst_16 {dimension_numbers = #tpu.dot_dimension_numbers<[1], [0], [0], [1], [0, 0, 1, 1], [], []>} : vector<128x24xbf16>, vector<24x128xbf16>, vector<128x128xf32> -> vector<128x128xf32>
    %cst_17 = arith.constant dense<0.000000e+00> : vector<128x128xf32>
    %74 = tpu.matmul %69, %72, %cst_17 {dimension_numbers = #tpu.dot_dimension_numbers<[1], [0], [0], [1], [0, 0, 1, 1], [], []>} : vector<128x24xbf16>, vector<24x128xbf16>, vector<128x128xf32> -> vector<128x128xf32>
    %cst_18 = arith.constant dense<0.000000e+00> : vector<128x128xf32>
    %75 = tpu.matmul %71, %72, %cst_18 {dimension_numbers = #tpu.dot_dimension_numbers<[1], [0], [0], [1], [0, 0, 1, 1], [], []>} : vector<128x24xbf16>, vector<24x128xbf16>, vector<128x128xf32> -> vector<128x128xf32>
    %76 = vector.shape_cast %73 : vector<128x128xf32> to vector<1x128x128xf32>
    %77 = vector.shape_cast %74 : vector<128x128xf32> to vector<1x128x128xf32>
    %78 = vector.shape_cast %75 : vector<128x128xf32> to vector<1x128x128xf32>
    %79 = arith.mulf %76, %76 : vector<1x128x128xf32>
    %cst_19 = arith.constant dense<0.000000e+00> : vector<1x128xf32>
    %80 = vector.multi_reduction <add>, %79, %cst_19 [2] : vector<1x128x128xf32> to vector<1x128xf32>
    %81 = arith.mulf %77, %77 : vector<1x128x128xf32>
    %cst_20 = arith.constant dense<0.000000e+00> : vector<1x128xf32>
    %82 = vector.multi_reduction <add>, %81, %cst_20 [2] : vector<1x128x128xf32> to vector<1x128xf32>
    %83 = arith.mulf %78, %78 : vector<1x128x128xf32>
    %cst_21 = arith.constant dense<0.000000e+00> : vector<1x128xf32>
    %84 = vector.multi_reduction <add>, %83, %cst_21 [2] : vector<1x128x128xf32> to vector<1x128xf32>
    %c0_22 = arith.constant 0 : index
    %85 = memref.load %arg1[%c0_22] : memref<2xf32, #tpu.memory_space<smem>>
    %c1 = arith.constant 1 : index
    %86 = memref.load %arg1[%c1] : memref<2xf32, #tpu.memory_space<smem>>
    %87 = arith.subf %80, %82 : vector<1x128xf32>
    %88 = vector.broadcast %85 : f32 to vector<1x128xf32>
    %89 = arith.addf %87, %88 : vector<1x128xf32>
    %cst_23 = arith.constant 0.000000e+00 : f32
    %90 = vector.broadcast %cst_23 : f32 to vector<1x128xf32>
    %91 = arith.maximumf %89, %90 : vector<1x128xf32>
    %92 = arith.subf %82, %84 : vector<1x128xf32>
    %93 = vector.broadcast %86 : f32 to vector<1x128xf32>
    %94 = arith.addf %92, %93 : vector<1x128xf32>
    %cst_24 = arith.constant 0.000000e+00 : f32
    %95 = vector.broadcast %cst_24 : f32 to vector<1x128xf32>
    %96 = arith.maximumf %94, %95 : vector<1x128xf32>
    %97 = arith.addf %91, %96 : vector<1x128xf32>
    %98 = vector.shape_cast %97 : vector<1x128xf32> to vector<1x1x128xf32>
    %c0_25 = arith.constant 0 : index
    %c0_26 = arith.constant 0 : index
    %c0_27 = arith.constant 0 : index
    %99 = vector.load %arg4[%c0_25, %c0_26, %c0_27] : memref<1x1x128xf32, #tpu.memory_space<vmem>>, vector<1x1x128xf32>
    tpu.vector_store %arg4[%c0_25, %c0_26, %c0_27], %98 {strides = array<i32>} : memref<1x1x128xf32, #tpu.memory_space<vmem>>, vector<1x1x128xf32>,
    return
  }
  func.func @transform_0(%arg0: i32) -> i32 {
    %c0_i32 = arith.constant 0 : i32
    %c0_i32_0 = arith.constant 0 : i32
    return %c0_i32 : i32
  }
  func.func @transform_1(%arg0: i32) -> (i32, i32) {
    %c0_i32 = arith.constant 0 : i32
    %c0_i32_0 = arith.constant 0 : i32
    return %arg0, %c0_i32 : i32, i32
  }
  func.func @transform_2(%arg0: i32) -> (i32, i32) {
    %c0_i32 = arith.constant 0 : i32
    %c0_i32_0 = arith.constant 0 : i32
    %c0_i32_1 = arith.constant 0 : i32
    return %c0_i32, %c0_i32_0 : i32, i32
  }
  func.func @transform_3(%arg0: i32) -> (i32, i32, i32) {
    %c0_i32 = arith.constant 0 : i32
    %c0_i32_0 = arith.constant 0 : i32
    %c0_i32_1 = arith.constant 0 : i32
    return %arg0, %c0_i32, %c0_i32_0 : i32, i32, i32
  }
}

</mosaic_0001>

<bundles_post_ra>
// kernel: tpu_custom_call.1
= control target key start
LH: loop header
LB: loop body
LE: loop exit
PB: predicated region body
PF: predicated region fallthrough
CT: control target
= control target key end

     0   :  { %8 = vsyncpa [#allocation4], 0  ;;  %s3987_s0 = inlined_call_operand.vmem [shape: f32[2], index: 0, kind: input, shape index: {}]   ;;  %s3988_s1 = inlined_call_operand.vmem [shape: s32[128,4], index: 1, kind: input, shape index: {}]   ;;  %s3989_s2 = inlined_call_operand.vmem [shape: bf16[24,128], index: 2, kind: input, shape index: {}]   ;;  %s3990_s3 = inlined_call_operand.hbm [shape: f32[1,1,128], index: 3, kind: output, shape index: {}]  }
   0x1   :  { %9 = vsyncpa [#allocation3], 0  ;;  %s16_s14 = sshll.u32 %s3987_s0, 4  ;;  %s17_s14 = int_to_ptr.vmem [resolvable:$true] %s16_s14 }
   0x2   :  { %s2060_s15 = scalar_lea.vmem %s17_s14, 16  ;;  %p2065_p1 = scmp.lt.s32.totalorder %s17_s14, %s17_s14 }
   0x3   :  { %p2061_p0 = scmp.ne.s32.totalorder %s17_s14, %s2060_s15  ;;  %p2066_p2 = scmp.lt.s32.totalorder %s2060_s15, %s2060_s15 }
   0x5   :  { %p2067_p3 = por %p2066_p2, %p2065_p1 }
   0x7   :  { %p2068_p4 = pnand %p2067_p3, %p2061_p0 }
   0x9   :  { %2071 = shalt.err (!%p2068_p4)
}
   0xa   :  { %s2098_s16 = smov [#allocation2]  }
   0xb   :  { %19 = dma.vmem_to_smem %s17_s14, 16, %s2098_s16, [#allocation4]  }
   0xc   :  { %2094 = dma.done.wait [#allocation4], 16  }
   0xd   :  { %2095 = vsyncadd [#allocation4], 4294967280 }
   0xe   :  { %27 = sfence }
   0xf   :  { %v2131_v0 = vld [vmem:[%s3988_s1 + $0x10] sm:$0xff]  ;;  %v2136_v1 = vld [vmem:[%s3988_s1] sm:$0xff]  ;;  %v2099_v2 = vmov 0   ;;  %v2143_v3 = vld [vmem:[%s3988_s1 + $0x18] sm:$0xff]  ;;  %v2100_v49 = vmov 1   ;;  %vm4059_vm0 = vcmask 1043456  }
  0x10   :  { %2026 = vset.pattern.permute.xlu1 %v2099_v2  ;;  %2025 = vset.pattern.permute.xlu0 %v2099_v2  ;;  %v2148_v4 = vld [vmem:[%s3988_s1 + $0x8] sm:$0xff]  ;;  %v2160_v6 = vld [vmem:[%s3988_s1 + $0x20] sm:$0xff]  ;;  %v2167_v7 = vld [vmem:[%s3988_s1 + $0x38] sm:$0xff]  ;;  %v2228_v18 = vadd.s32 8, %v2136_v1  ;;  %v2233_v19 = vadd.s32 8, %v2143_v3  ;;  %v2236_v20 = vadd.s32 8, %v2131_v0 }
  0x11   :  { %54 = vperm.xlu1 %2026, %v2131_v0   ;;  %48 = vperm.xlu0 %2025, %v2136_v1   ;;  %v2155_v5 = vld [vmem:[%s3988_s1 + $0x28] sm:$0xff]  ;;  %4068 = vst [vmem:[#allocation9_spill] sm:$0xff] %v2167_v7  ;;  %v2172_v8 = vld [vmem:[%s3988_s1 + $0x30] sm:$0xff]  ;;  %v2184_v10 = vld [vmem:[%s3988_s1 + $0x40] sm:$0xff]  ;;  %v2225_v17 = vadd.s32 8, %v2148_v4  ;;  %v2244_v22 = vadd.s32 8, %v2160_v6 }
  0x12   :  { %4067 = vst [vmem:[#allocation8_spill] sm:$0xff] %v2155_v5  ;;  %v2179_v9 = vld [vmem:[%s3988_s1 + $0x48] sm:$0xff]  ;;  %v2191_v11 = vld [vmem:[%s3988_s1 + $0x58] sm:$0xff]  ;;  %v2196_v12 = vld [vmem:[%s3988_s1 + $0x50] sm:$0xff]  ;;  %v2241_v21 = vadd.s32 8, %v2155_v5  ;;  %v2249_v23 = vadd.s32 8, %v2167_v7 }
  0x13   :  { %v2203_v13 = vld [vmem:[%s3988_s1 + $0x68] sm:$0xff]  ;;  %v2208_v14 = vld [vmem:[%s3988_s1 + $0x60] sm:$0xff]  ;;  %v2215_v15 = vld [vmem:[%s3988_s1 + $0x78] sm:$0xff]  ;;  %4069 = vst [vmem:[#allocation10_spill] sm:$0xff] %v2236_v20  ;;  %v2252_v24 = vadd.s32 8, %v2172_v8  ;;  %v2257_v25 = vadd.s32 8, %v2179_v9 }
  0x14   :  { %v2220_v16 = vld [vmem:[%s3988_s1 + $0x70] sm:$0xff]  ;;  %4070 = vst [vmem:[#allocation11_spill] sm:$0xff] %v2244_v22  ;;  %4071 = vst [vmem:[#allocation12_spill] sm:$0xff] %v2249_v23  ;;  %v2260_v26 = vadd.s32 8, %v2184_v10  ;;  %v2265_v27 = vadd.s32 8, %v2191_v11  ;;  %v2268_v28 = vadd.s32 8, %v2196_v12 }
  0x15   :  { %57 = vperm.xlu1 %2026, %v2143_v3   ;;  %51 = vperm.xlu0 %2025, %v2148_v4   ;;  %4072 = vst [vmem:[#allocation13_spill] sm:$0xff] %v2252_v24  ;;  %4073 = vst [vmem:[#allocation14_spill] sm:$0xff] %v2257_v25  ;;  %v2273_v29 = vadd.s32 8, %v2203_v13  ;;  %v2276_v30 = vadd.s32 8, %v2208_v14  ;;  %v2281_v31 = vadd.s32 8, %v2215_v15  ;;  %v2284_v32 = vadd.s32 8, %v2220_v16 }
  0x16   :  { %4074 = vst [vmem:[#allocation15_spill] sm:$0xff] %v2260_v26  ;;  %4075 = vst [vmem:[#allocation16_spill] sm:$0xff] %v2265_v27  ;;  %v2289_v33 = vadd.s32 16, %v2148_v4  ;;  %v2292_v34 = vadd.s32 16, %v2136_v1  ;;  %v2297_v35 = vadd.s32 16, %v2143_v3  ;;  %v2300_v36 = vadd.s32 16, %v2131_v0 }
  0x17   :  { %4076 = vst [vmem:[#allocation17_spill] sm:$0xff] %v2268_v28  ;;  %4077 = vst [vmem:[#allocation18_spill] sm:$0xff] %v2273_v29  ;;  %v2305_v37 = vadd.s32 16, %v2155_v5  ;;  %v2308_v38 = vadd.s32 16, %v2160_v6  ;;  %v2313_v39 = vadd.s32 16, %v2167_v7  ;;  %v2316_v40 = vadd.s32 16, %v2172_v8 }
  0x18   :  { %4078 = vst [vmem:[#allocation19_spill] sm:$0xff] %v2276_v30  ;;  %4079 = vst [vmem:[#allocation20_spill] sm:$0xff] %v2281_v31  ;;  %v2321_v41 = vadd.s32 16, %v2179_v9  ;;  %v2324_v42 = vadd.s32 16, %v2184_v10  ;;  %v2329_v43 = vadd.s32 16, %v2191_v11  ;;  %v2332_v44 = vadd.s32 16, %v2196_v12 }
  0x19   :  { %63 = vperm.xlu1 %2026, %v2155_v5   ;;  %60 = vperm.xlu0 %2025, %v2160_v6   ;;  %4080 = vst [vmem:[#allocation21_spill] sm:$0xff] %v2284_v32  ;;  %4081 = vst [vmem:[#allocation22_spill] sm:$0xff] %v2289_v33  ;;  %v2337_v45 = vadd.s32 16, %v2203_v13  ;;  %v2340_v46 = vadd.s32 16, %v2208_v14  ;;  %v2345_v47 = vadd.s32 16, %v2215_v15  ;;  %v2348_v48 = vadd.s32 16, %v2220_v16 }
  0x1a   :  { %4082 = vst [vmem:[#allocation23_spill] sm:$0xff] %v2297_v35  ;;  %4083 = vst [vmem:[#allocation24_spill] sm:$0xff] %v2305_v37  ;;  %s1919_s4 = sld [smem:[#allocation2 + $0x1]]  ;;  %s2104_s5 = smov [#allocation5]  }
  0x1b   :  { %4084 = vst [vmem:[#allocation25_spill] sm:$0xff] %v2308_v38  ;;  %4085 = vst [vmem:[#allocation26_spill] sm:$0xff] %v2313_v39  ;;  %s1884_s6 = sshll.u32 %s2104_s5, 4  ;;  %s1885_s6 = int_to_ptr.vmem [resolvable:$true] %s1884_s6 }
  0x1c   :  { %4086 = vst [vmem:[#allocation27_spill] sm:$0xff] %v2316_v40  ;;  %4087 = vst [vmem:[#allocation28_spill] sm:$0xff] %v2321_v41  ;;  %s2072_s7 = scalar_lea.vmem %s1885_s6, 16  ;;  %s2076_s8 = scalar_lea.vmem %s1885_s6, 32 }
  0x1d   :  { %69 = vperm.xlu1 %2026, %v2167_v7   ;;  %66 = vperm.xlu0 %2025, %v2172_v8   ;;  %4088 = vst [vmem:[#allocation29_spill] sm:$0xff] %v2324_v42  ;;  %4089 = vst [vmem:[#allocation30_spill] sm:$0xff] %v2329_v43  ;;  %p2073_p5 = scmp.ne.s32.totalorder %s1885_s6, %s2072_s7  ;;  %p2077_p6 = scmp.lt.s32.totalorder %s1885_s6, %s1885_s6 }
  0x1e   :  { %4090 = vst [vmem:[#allocation31_spill] sm:$0xff] %v2332_v44  ;;  %4091 = vst [vmem:[#allocation32_spill] sm:$0xff] %v2337_v45  ;;  %p2078_p7 = scmp.lt.s32.totalorder %s2076_s8, %s2072_s7 }
  0x1f   :  { %4092 = vst [vmem:[#allocation33_spill] sm:$0xff] %v2340_v46  ;;  %4093 = vst [vmem:[#allocation34_spill] sm:$0xff] %v2345_v47 }
  0x20   :  { %4094 = vst [vmem:[#allocation35_spill] sm:$0xff] %v2348_v48  ;;  %p2079_p8 = por %p2078_p7, %p2077_p6 }
  0x21   :  { %75 = vperm.xlu1 %2026, %v2179_v9   ;;  %72 = vperm.xlu0 %2025, %v2184_v10  }
  0x22   :  { %p2080_p9 = pnand %p2079_p8, %p2073_p5 }
  0x25   :  { %81 = vperm.xlu1 %2026, %v2191_v11   ;;  %78 = vperm.xlu0 %2025, %v2196_v12  }
  0x29   :  { %87 = vperm.xlu1 %2026, %v2203_v13   ;;  %84 = vperm.xlu0 %2025, %v2208_v14  }
  0x2d   :  { %93 = vperm.xlu1 %2026, %v2215_v15   ;;  %90 = vperm.xlu0 %2025, %v2220_v16  }
  0x31   :  { %131 = vperm.xlu1 %2026, %v2225_v17   ;;  %128 = vperm.xlu0 %2025, %v2228_v18  }
  0x35   :  { %137 = vperm.xlu1 %2026, %v2233_v19   ;;  %134 = vperm.xlu0 %2025, %v2236_v20  }
  0x39   :  { %143 = vperm.xlu1 %2026, %v2241_v21   ;;  %140 = vperm.xlu0 %2025, %v2244_v22  }
  0x3d   :  { %149 = vperm.xlu1 %2026, %v2249_v23   ;;  %146 = vperm.xlu0 %2025, %v2252_v24  }
  0x41   :  { %155 = vperm.xlu1 %2026, %v2257_v25   ;;  %152 = vperm.xlu0 %2025, %v2260_v26  }
  0x45   :  { %161 = vperm.xlu1 %2026, %v2265_v27   ;;  %158 = vperm.xlu0 %2025, %v2268_v28  }
  0x49   :  { %167 = vperm.xlu1 %2026, %v2273_v29   ;;  %164 = vperm.xlu0 %2025, %v2276_v30  }
  0x4d   :  { %173 = vperm.xlu1 %2026, %v2281_v31   ;;  %170 = vperm.xlu0 %2025, %v2284_v32  }
  0x51   :  { %227 = vperm.xlu1 %2026, %v2289_v33   ;;  %224 = vperm.xlu0 %2025, %v2292_v34  }
  0x55   :  { %233 = vperm.xlu1 %2026, %v2297_v35   ;;  %230 = vperm.xlu0 %2025, %v2300_v36  }
  0x59   :  { %239 = vperm.xlu1 %2026, %v2305_v37   ;;  %236 = vperm.xlu0 %2025, %v2308_v38  }
  0x5d   :  { %245 = vperm.xlu1 %2026, %v2313_v39   ;;  %242 = vperm.xlu0 %2025, %v2316_v40  }
  0x61   :  { %251 = vperm.xlu1 %2026, %v2321_v41   ;;  %248 = vperm.xlu0 %2025, %v2324_v42  }
  0x65   :  { %257 = vperm.xlu1 %2026, %v2329_v43   ;;  %254 = vperm.xlu0 %2025, %v2332_v44  }
  0x69   :  { %263 = vperm.xlu1 %2026, %v2337_v45   ;;  %260 = vperm.xlu0 %2025, %v2340_v46  }
  0x6d   :  { %269 = vperm.xlu1 %2026, %v2345_v47   ;;  %266 = vperm.xlu0 %2025, %v2348_v48  }
  0x71   :  { %2028 = vset.pattern.permute.xlu1 %v2100_v49  ;;  %2027 = vset.pattern.permute.xlu0 %v2100_v49 }
  0x72   :  { %323 = vperm.xlu1 %2028, %v2148_v4   ;;  %320 = vperm.xlu0 %2027, %v2136_v1  }
  0x76   :  { %326 = vperm.xlu1 %2028, %v2131_v0   ;;  %329 = vperm.xlu0 %2027, %v2143_v3  }
  0x7a   :  { %332 = vperm.xlu1 %2028, %v2160_v6   ;;  %335 = vperm.xlu0 %2027, %v2155_v5  }
  0x7e   :  { %338 = vperm.xlu1 %2028, %v2172_v8   ;;  %341 = vperm.xlu0 %2027, %v2167_v7  }
  0x82   :  { %344 = vperm.xlu1 %2028, %v2184_v10   ;;  %347 = vperm.xlu0 %2027, %v2179_v9  }
  0x86   :  { %350 = vperm.xlu1 %2028, %v2196_v12   ;;  %353 = vperm.xlu0 %2027, %v2191_v11  }
  0x8a   :  { %356 = vperm.xlu1 %2028, %v2208_v14   ;;  %359 = vperm.xlu0 %2027, %v2203_v13  }
  0x8e   :  { %362 = vperm.xlu1 %2028, %v2220_v16   ;;  %365 = vperm.xlu0 %2027, %v2215_v15  }
  0x90   :  { %v2368_v50 = vpop.permute.xlu1 %54  ;;  %v2370_v51 = vpop.permute.xlu0 %48 }
  0x92   :  { %384 = vperm.xlu1 %2028, %v2228_v18   ;;  %387 = vperm.xlu0 %2027, %v2225_v17  }
  0x94   :  { %v2374_v52 = vpop.permute.xlu1 %57  ;;  %v2376_v53 = vpop.permute.xlu0 %51 }
  0x96   :  { %390 = vperm.xlu1 %2028, %v2236_v20   ;;  %393 = vperm.xlu0 %2027, %v2233_v19  }
  0x98   :  { %v2380_v54 = vpop.permute.xlu1 %63  ;;  %v2382_v55 = vpop.permute.xlu0 %60 }
  0x9a   :  { %396 = vperm.xlu1 %2028, %v2244_v22   ;;  %399 = vperm.xlu0 %2027, %v2241_v21  }
  0x9c   :  { %v2386_v56 = vpop.permute.xlu1 %69  ;;  %v2388_v57 = vpop.permute.xlu0 %66 }
  0x9e   :  { %402 = vperm.xlu1 %2028, %v2252_v24   ;;  %405 = vperm.xlu0 %2027, %v2249_v23  }
  0xa0   :  { %v2392_v58 = vpop.permute.xlu1 %75  ;;  %v2394_v59 = vpop.permute.xlu0 %72 }
  0xa1   :  { %4095 = vst [vmem:[#allocation36_spill] sm:$0xff] %v2392_v58 }
  0xa2   :  { %408 = vperm.xlu1 %2028, %v2260_v26   ;;  %411 = vperm.xlu0 %2027, %v2257_v25  }
  0xa4   :  { %v2398_v60 = vpop.permute.xlu1 %81  ;;  %v2400_v61 = vpop.permute.xlu0 %78 }
  0xa5   :  { %4096 = vst [vmem:[#allocation37_spill] sm:$0xff] %v2398_v60  ;;  %4097 = vst [vmem:[#allocation38_spill] sm:$0xff] %v2400_v61 }
  0xa6   :  { %414 = vperm.xlu1 %2028, %v2268_v28   ;;  %417 = vperm.xlu0 %2027, %v2265_v27  }
  0xa8   :  { %v2404_v62 = vpop.permute.xlu1 %87  ;;  %v2406_v63 = vpop.permute.xlu0 %84 }
  0xa9   :  { %4098 = vst [vmem:[#allocation39_spill] sm:$0xff] %v2404_v62  ;;  %4099 = vst [vmem:[#allocation40_spill] sm:$0xff] %v2406_v63  ;;  %v2443_v63 = vld [vmem:[%s3989_s2 + $0x8] ss:$0 sps:$4 sm:$0xff]  }
  0xaa   :  { %420 = vperm.xlu1 %2028, %v2276_v30   ;;  %423 = vperm.xlu0 %2027, %v2273_v29   ;;  %4103 = vst [vmem:[#allocation44_spill] sm:$0xff] %v2443_v63 }
  0xac   :  { %v2410_v2 = vpop.permute.xlu1 %93  ;;  %v2412_v49 = vpop.permute.xlu0 %90 }
  0xad   :  { %4100 = vst [vmem:[#allocation41_spill] sm:$0xff] %v2410_v2  ;;  %4101 = vst [vmem:[#allocation42_spill] sm:$0xff] %v2412_v49  ;;  %v2429_v49 = vld [vmem:[%s3989_s2] sm:$0xff]  }
  0xae   :  { %426 = vperm.xlu1 %2028, %v2284_v32   ;;  %429 = vperm.xlu0 %2027, %v2281_v31   ;;  %4102 = vst [vmem:[#allocation43_spill] sm:$0xff] %v2429_v49 }
  0xaf   :  { %1950 = vmatprep.subr.bf16.mxu0 %v2429_v49  ;;  %2010 = vmatprep.subr.bf16.mxu1 %v2429_v49 }
  0xb0   :  { %v2416_v26 = vpop.permute.xlu1 %131  ;;  %v2418_v28 = vpop.permute.xlu0 %128  ;;  %1951 = vmatpush3.bf16.msra.mxu0 %v2429_v49  ;;  %2012 = vmatpush3.bf16.msra.mxu1 %v2429_v49 }
  0xb1   :  { %2014 = vmatprep.subr.msk.bf16.mxu0 %vm4059_vm0, %v2443_v63  ;;  %2015 = vmatprep.subr.msk.bf16.mxu1 %vm4059_vm0, %v2443_v63 }
  0xb2   :  { %464 = vperm.xlu1 %2028, %v2292_v34   ;;  %467 = vperm.xlu0 %2027, %v2289_v33  }
  0xb4   :  { %v2422_v22 = vpop.permute.xlu1 %137  ;;  %v2424_v30 = vpop.permute.xlu0 %134 }
  0xb6   :  { %470 = vperm.xlu1 %2028, %v2300_v36   ;;  %473 = vperm.xlu0 %2027, %v2297_v35   ;;  %v2450_v35 = vsel %vm4059_vm0, %v2443_v63, 0 }
  0xb7   :  { %4104 = vst [vmem:[#allocation45_spill] sm:$0xff] %v2450_v35  ;;  %1953 = vmatpush3.bf16.msra.mxu0 %v2450_v35  ;;  %2013 = vmatpush3.bf16.msra.mxu1 %v2450_v35 }
  0xb8   :  { %v2435_v32 = vpop.permute.xlu1 %143  ;;  %v2437_v2 = vpop.permute.xlu0 %140  ;;  %1990 = vmatprep.subr.bf16.mxu0 %v2429_v49  ;;  %1970 = vmatprep.subr.bf16.mxu1 %v2429_v49 }
  0xba   :  { %476 = vperm.xlu1 %2028, %v2308_v38   ;;  %479 = vperm.xlu0 %2027, %v2305_v37  }
  0xbc   :  { %v2456_v62 = vpop.permute.xlu1 %149  ;;  %v2458_v61 = vpop.permute.xlu0 %146 }
  0xbe   :  { %482 = vperm.xlu1 %2028, %v2316_v40   ;;  %485 = vperm.xlu0 %2027, %v2313_v39  }
  0xc0   :  { %v2466_v38 = vpop.permute.xlu1 %155  ;;  %v2468_v60 = vpop.permute.xlu0 %152 }
  0xc2   :  { %488 = vperm.xlu1 %2028, %v2324_v42   ;;  %491 = vperm.xlu0 %2027, %v2321_v41  }
  0xc4   :  { %v2472_v63 = vpop.permute.xlu1 %161  ;;  %v2474_v58 = vpop.permute.xlu0 %158 }
  0xc5   :  { %4105 = vst [vmem:[#allocation46_spill] sm:$0xff] %v2474_v58 }
  0xc6   :  { %494 = vperm.xlu1 %2028, %v2332_v44   ;;  %497 = vperm.xlu0 %2027, %v2329_v43   ;;  %v4033_v43 = vmov 2  }
  0xc8   :  { %v2478_v35 = vpop.permute.xlu1 %167  ;;  %v2480_v40 = vpop.permute.xlu0 %164 }
  0xc9   :  { %4106 = vst [vmem:[#allocation47_spill] sm:$0xff] %v2478_v35  ;;  %4107 = vst [vmem:[#allocation48_spill] sm:$0xff] %v2480_v40  ;;  %v4035_v40 = vmov 3  }
  0xca   :  { %500 = vperm.xlu1 %2028, %v2340_v46   ;;  %503 = vperm.xlu0 %2027, %v2337_v45  }
  0xcc   :  { %v2484_v39 = vpop.permute.xlu1 %173  ;;  %v2486_v42 = vpop.permute.xlu0 %170 }
  0xcd   :  { %4108 = vst [vmem:[#allocation49_spill] sm:$0xff] %v2484_v39  ;;  %4109 = vst [vmem:[#allocation50_spill] sm:$0xff] %v2486_v42 }
  0xce   :  { %506 = vperm.xlu1 %2028, %v2348_v48   ;;  %509 = vperm.xlu0 %2027, %v2345_v47  }
  0xd0   :  { %v2490_v49 = vpop.permute.xlu1 %227  ;;  %v2492_v44 = vpop.permute.xlu0 %224 }
  0xd2   :  { %2029 = vset.pattern.permute.xlu1 %v4033_v43  ;;  %2030 = vset.pattern.permute.xlu0 %v4035_v40 }
  0xd3   :  { %560 = vperm.xlu1 %2029, %v2136_v1   ;;  %800 = vperm.xlu0 %2030, %v2136_v1  }
  0xd4   :  { %v2498_v46 = vpop.permute.xlu1 %233  ;;  %v2500_v42 = vpop.permute.xlu0 %230 }
  0xd7   :  { %566 = vperm.xlu1 %2029, %v2131_v0   ;;  %867 = vperm.xlu0 %2030, %v2225_v17  }
  0xd8   :  { %v2504_v48 = vpop.permute.xlu1 %239  ;;  %v2506_v47 = vpop.permute.xlu0 %236 }
  0xdb   :  { %569 = vperm.xlu1 %2029, %v2143_v3   ;;  %870 = vperm.xlu0 %2030, %v2236_v20  }
  0xdc   :  { %v2510_v43 = vpop.permute.xlu1 %245  ;;  %v2512_v40 = vpop.permute.xlu0 %242 }
  0xdf   :  { %575 = vperm.xlu1 %2029, %v2155_v5   ;;  %947 = vperm.xlu0 %2030, %v2289_v33  }
  0xe0   :  { %v2516_v1 = vpop.permute.xlu1 %251  ;;  %v2518_v39 = vpop.permute.xlu0 %248 }
  0xe3   :  { %581 = vperm.xlu1 %2029, %v2167_v7   ;;  %812 = vperm.xlu0 %2030, %v2160_v6  }
  0xe4   :  { %v2522_v35 = vpop.permute.xlu1 %257  ;;  %v2524_v58 = vpop.permute.xlu0 %254 }
  0xe5   :  { %4110 = vst [vmem:[#allocation51_spill] sm:$0xff] %v2524_v58 }
  0xe7   :  { %587 = vperm.xlu1 %2029, %v2179_v9   ;;  %879 = vperm.xlu0 %2030, %v2241_v21  }
  0xe8   :  { %v2528_v20 = vpop.permute.xlu1 %263  ;;  %v2530_v5 = vpop.permute.xlu0 %260 }
  0xe9   :  { %4111 = vst [vmem:[#allocation52_spill] sm:$0xff] %v2528_v20  ;;  %4112 = vst [vmem:[#allocation53_spill] sm:$0xff] %v2530_v5  ;;  %v4120_v5 = vmov 3  }
  0xeb   :  { %593 = vperm.xlu1 %2029, %v2191_v11   ;;  %882 = vperm.xlu0 %2030, %v2252_v24  }
  0xec   :  { %v2534_v33 = vpop.permute.xlu1 %269  ;;  %v2536_v7 = vpop.permute.xlu0 %266 }
  0xed   :  { %4113 = vst [vmem:[#allocation54_spill] sm:$0xff] %v2534_v33  ;;  %4114 = vst [vmem:[#allocation55_spill] sm:$0xff] %v2536_v7 }
  0xef   :  { %599 = vperm.xlu1 %2029, %v2203_v13   ;;  %959 = vperm.xlu0 %2030, %v2305_v37  }
  0xf1   :  { %v2540_v58 = vpop.permute.xlu1 %323  ;;  %v2542_v9 = vpop.permute.xlu0 %320 }
  0xf3   :  { %605 = vperm.xlu1 %2029, %v2215_v15   ;;  %824 = vperm.xlu0 %2030, %v2184_v10  }
  0xf5   :  { %v2546_v20 = vpop.permute.xlu1 %326  ;;  %v2548_v11 = vpop.permute.xlu0 %329 }
  0xf7   :  { %627 = vperm.xlu1 %2029, %v2225_v17   ;;  %891 = vperm.xlu0 %2030, %v2257_v25  }
  0xf9   :  { %v2552_v24 = vpop.permute.xlu1 %332  ;;  %v2554_v13 = vpop.permute.xlu0 %335 }
  0xfb   :  { %633 = vperm.xlu1 %2029, %v2233_v19   ;;  %830 = vperm.xlu0 %2030, %v2196_v12  }
  0xfd   :  { %v2558_v37 = vpop.permute.xlu1 %338  ;;  %v2560_v15 = vpop.permute.xlu0 %341 }
  0xfe   :  { %4115 = vst [vmem:[#allocation56_spill] sm:$0xff] %v2558_v37 }
  0xff   :  { %639 = vperm.xlu1 %2029, %v2241_v21   ;;  %897 = vperm.xlu0 %2030, %v2265_v27  }
 0x101   :  { %v2564_v33 = vpop.permute.xlu1 %344  ;;  %v2566_v17 = vpop.permute.xlu0 %347 }
 0x102   :  { %4116 = vst [vmem:[#allocation57_spill] sm:$0xff] %v2564_v33  ;;  %4117 = vst [vmem:[#allocation58_spill] sm:$0xff] %v2566_v17 }
 0x103   :  { %645 = vperm.xlu1 %2029, %v2249_v23   ;;  %971 = vperm.xlu0 %2030, %v2321_v41  }
 0x105   :  { %v2570_v25 = vpop.permute.xlu1 %350  ;;  %v2572_v7 = vpop.permute.xlu0 %353 }
 0x106   :  { %4118 = vst [vmem:[#allocation59_spill] sm:$0xff] %v2570_v25  ;;  %4119 = vst [vmem:[#allocation60_spill] sm:$0xff] %v2572_v7  ;;  %v4125_v7 = vmov 2  }
 0x107   :  { %2031 = vset.pattern.permute.xlu1 %v4120_v5  ;;  %836 = vperm.xlu0 %2030, %v2208_v14  }
 0x108   :  { %803 = vperm.xlu1 %2031, %v2148_v4  }
 0x109   :  { %v2577_v21 = vpop.permute.xlu1 %356  ;;  %v2579_v27 = vpop.permute.xlu0 %359 }
 0x10a   :  { %4121 = vst [vmem:[#allocation61_spill] sm:$0xff] %v2577_v21  ;;  %4122 = vst [vmem:[#allocation62_spill] sm:$0xff] %v2579_v27  ;;  %v4060_v21 = vlaneseq }
 0x10b   :  { %903 = vperm.xlu0 %2030, %v2273_v29  }
 0x10c   :  { %864 = vperm.xlu1 %2031, %v2228_v18  }
 0x10d   :  { %v2583_v23 = vpop.permute.xlu1 %362  ;;  %v2585_v41 = vpop.permute.xlu0 %365 }
 0x10e   :  { %4123 = vst [vmem:[#allocation63_spill] sm:$0xff] %v2583_v23  ;;  %4124 = vst [vmem:[#allocation64_spill] sm:$0xff] %v2585_v41 }
 0x10f   :  { %842 = vperm.xlu0 %2030, %v2220_v16  }
 0x110   :  { %2032 = vset.pattern.permute.xlu1 %v4125_v7 }
 0x111   :  { %704 = vperm.xlu1 %2032, %v2292_v34   ;;  %v2590_v25 = vpop.permute.xlu1 %384  ;;  %v2592_v33 = vpop.permute.xlu0 %387 }
 0x113   :  { %909 = vperm.xlu0 %2030, %v2281_v31  }
 0x115   :  { %2033 = vset.pattern.permute.xlu1 %v4120_v5  ;;  %v2596_v29 = vpop.permute.xlu1 %390  ;;  %v2598_v27 = vpop.permute.xlu0 %393 }
 0x116   :  { %806 = vperm.xlu1 %2033, %v2131_v0   ;;  %v2615_v0 = vand.u32 127, %v4060_v21 }
 0x117   :  { %983 = vperm.xlu0 %2030, %v2337_v45  }
 0x118   :  { %vm96_vm1 = vcmp.eq.s32.totalorder %v2615_v0, %v2376_v53  ;;  %vm176_vm2 = vcmp.eq.s32.totalorder %v2615_v0, %v2416_v26  ;;  %vm95_vm3 = vcmp.eq.s32.totalorder %v2615_v0, %v2370_v51  ;;  %vm175_vm4 = vcmp.eq.s32.totalorder %v2615_v0, %v2418_v28  ;;  %v4147_v53 = vld [vmem:[#allocation37_spill] sm:$0xff]  ;;  %v4191_v26 = vld [vmem:[#allocation8_spill] sm:$0xff] }
 0x119   :  { %v2602_v41 = vpop.permute.xlu1 %396  ;;  %v2604_v23 = vpop.permute.xlu0 %399  ;;  %vm178_vm5 = vcmp.eq.s32.totalorder %v2615_v0, %v2422_v22  ;;  %vm2634_vm6 = vmor %vm96_vm1, %vm176_vm2  ;;  %vm177_vm7 = vcmp.eq.s32.totalorder %v2615_v0, %v2424_v30  ;;  %vm98_vm8 = vcmp.eq.s32.totalorder %v2615_v0, %v2374_v52  ;;  %vm180_vm10 = vcmp.eq.s32.totalorder %v2615_v0, %v2435_v32  ;;  %v4209_v52 = vld [vmem:[#allocation11_spill] sm:$0xff] }
 0x11a   :  { %809 = vperm.xlu1 %2033, %v2143_v3   ;;  %vm2646_vm9 = vmor %vm95_vm3, %vm175_vm4  ;;  %vm97_vm11 = vcmp.eq.s32.totalorder %v2615_v0, %v2368_v50  ;;  %vm99_vm12 = vcmp.eq.s32.totalorder %v2615_v0, %v2382_v55  ;;  %vm179_vm14 = vcmp.eq.s32.totalorder %v2615_v0, %v2437_v2  ;;  %vm100_vm15 = vcmp.eq.s32.totalorder %v2615_v0, %v2380_v54  ;;  %v4148_v54 = vld [vmem:[#allocation38_spill] sm:$0xff] }
 0x11b   :  { %2050 = vset.pattern.permute.xlu0 %v4125_v7  ;;  %vm2657_vm13 = vmor %vm98_vm8, %vm178_vm5  ;;  %vm182_vm2 = vcmp.eq.s32.totalorder %v2615_v0, %v2456_v62  ;;  %vm101_vm3 = vcmp.eq.s32.totalorder %v2615_v0, %v2388_v57  ;;  %vm181_vm5 = vcmp.eq.s32.totalorder %v2615_v0, %v2458_v61  ;;  %v4140_v50 = vmov 0  ;;  %v4156_v57 = vld [vmem:[#allocation40_spill] sm:$0xff]  ;;  %v4166_v62 = vld [vmem:[#allocation47_spill] sm:$0xff] }
 0x11c   :  { %563 = vperm.xlu0 %2050, %v2148_v4   ;;  %vm2666_vm1 = vmor %vm97_vm11, %vm177_vm7  ;;  %vm102_vm7 = vcmp.eq.s32.totalorder %v2615_v0, %v2386_v56  ;;  %v4150_v55 = vmov 0  ;;  %v4153_v56 = vmov 0  ;;  %v4162_v61 = vmov 0 }
 0x11d   :  { %v2609_v31 = vpop.permute.xlu1 %402  ;;  %v2611_v17 = vpop.permute.xlu0 %405  ;;  %vm2675_vm4 = vmor %vm100_vm15, %vm180_vm10  ;;  %vm272_vm10 = vcmp.eq.s32.totalorder %v2615_v0, %v2490_v49  ;;  %vm271_vm15 = vcmp.eq.s32.totalorder %v2615_v0, %v2492_v44  ;;  %v4173_v2 = vmov 0  ;;  %v4061_v49 = vmov 0.0  }
 0x11e   :  { %873 = vperm.xlu1 %2033, %v2233_v19   ;;  %vm2687_vm8 = vmor %vm99_vm12, %vm179_vm14  ;;  %vm4161_vm12 = vcmp.eq.s32.totalorder %v2615_v0, %v2500_v42  ;;  %v4168_v42 = vmov 0  ;;  %v4207_v44 = vmov 0 }
 0x11f   :  { %vm2693_vm11 = vmor %vm102_vm7, %vm182_vm2  ;;  %vm4167_vm7 = vcmp.eq.s32.totalorder %v2615_v0, %v2506_v47 }
 0x120   :  { %572 = vperm.xlu0 %2050, %v2160_v6   ;;  %vm2700_vm0 = vmor %vm101_vm3, %vm181_vm5  ;;  %vm4157_vm5 = vcmp.eq.s32.totalorder %v2615_v0, %v2468_v60  ;;  %v4164_v60 = vld [vmem:[#allocation23_spill] sm:$0xff] }
 0x121   :  { %v2618_v45 = vpop.permute.xlu1 %408  ;;  %v2620_v37 = vpop.permute.xlu0 %411  ;;  %v4141_v50 = vsel %vm2700_vm0, 4294967295, %v4140_v50  ;;  %vm2716_vm3 = vmor %vm2634_vm6, %vm272_vm10  ;;  %vm4152_vm6 = vcmp.eq.s32.totalorder %v2615_v0, %v2498_v46  ;;  %v4159_v46 = vmov 0 }
 0x122   :  { %944 = vperm.xlu1 %2033, %v2292_v34   ;;  %vm2730_vm2 = vmor %vm2646_vm9, %vm271_vm15  ;;  %vm4149_vm9 = vcmp.eq.s32.totalorder %v2615_v0, %v2466_v38  ;;  %v4155_v38 = vld [vmem:[#allocation39_spill] sm:$0xff]  ;;  %v4258_v34 = vld [vmem:[#allocation57_spill] sm:$0xff] }
 0x123   :  { %vm2756_vm10 = vmor %vm2657_vm13, %vm4152_vm6  ;;  %vm4158_vm13 = vcmp.eq.s32.totalorder %v2615_v0, %v2394_v59  ;;  %v4165_v59 = vld [vmem:[#allocation46_spill] sm:$0xff]  ;;  %v2872_v3 = vsel %vm2730_vm2, 1.0, %v4061_v49  ;;  %vm4192_vm2 = vcmp.eq.s32.totalorder %v2615_v0, %v2512_v40 }
 0x124   :  { %578 = vperm.xlu0 %2050, %v2172_v8   ;;  %v4154_v56 = vsel %vm2756_vm10, 4294967295, %v4153_v56  ;;  %vm2774_vm6 = vmor %vm4158_vm13, %vm4157_vm5  ;;  %vm368_vm5 = vcmp.eq.s32.totalorder %v2615_v0, %v2540_v58  ;;  %vm4170_vm13 = vcmp.eq.s32.totalorder %v2615_v0, %v2590_v25  ;;  %v4183_v58 = vld [vmem:[#allocation49_spill] sm:$0xff]  ;;  %vm4184_vm0 = vcmp.eq.s32.totalorder %v2615_v0, %v4165_v59  ;;  %v4292_v59 = vld [vmem:[#allocation22_spill] sm:$0xff] }
 0x125   :  { %v2640_v4 = vpop.permute.xlu1 %414  ;;  %v2642_v6 = vpop.permute.xlu0 %417  ;;  %v4160_v46 = vsel %vm2774_vm6, 4294967295, %v4159_v46 }
 0x126   :  { %2034 = vset.pattern.permute.xlu1 %v4125_v7 }
 0x127   :  { %710 = vperm.xlu1 %2034, %v2300_v36  }
 0x128   :  { %584 = vperm.xlu0 %2050, %v2184_v10   ;;  %v4199_v10 = vld [vmem:[#allocation50_spill] sm:$0xff] }
 0x129   :  { %v2681_v30 = vpop.permute.xlu1 %420  ;;  %v2683_v32 = vpop.permute.xlu0 %423 }
 0x12b   :  { %2035 = vset.pattern.permute.xlu1 %v4120_v5 }
 0x12c   :  { %950 = vperm.xlu1 %2035, %v2300_v36   ;;  %590 = vperm.xlu0 %2050, %v2196_v12   ;;  %v4144_v12 = vld [vmem:[#allocation36_spill] sm:$0xff] }
 0x12d   :  { %v2722_v51 = vpop.permute.xlu1 %426  ;;  %v2724_v36 = vpop.permute.xlu0 %429  ;;  %vm104_vm14 = vcmp.eq.s32.totalorder %v2615_v0, %v4144_v12 }
 0x12e   :  { %vm2747_vm15 = vmor %vm104_vm14, %vm4149_vm9  ;;  %vm4171_vm9 = vcmp.eq.s32.totalorder %v2615_v0, %v2542_v9  ;;  %v2867_v9 = vsel %vm2716_vm3, 1.0, %v4061_v49 }
 0x12f   :  { %v4151_v55 = vsel %vm2747_vm15, 4294967295, %v4150_v55  ;;  %vm2785_vm14 = vmor %vm2666_vm1, %vm4161_vm12  ;;  %vm4179_vm12 = vcmp.eq.s32.totalorder %v2615_v0, %v4147_v53 }
 0x130   :  { %v4163_v61 = vsel %vm2785_vm14, 4294967295, %v4162_v61  ;;  %953 = vperm.xlu1 %2035, %v4164_v60   ;;  %596 = vperm.xlu0 %2050, %v2208_v14   ;;  %vm2800_vm1 = vmor %vm2687_vm8, %vm4167_vm7  ;;  %vm4172_vm8 = vcmp.eq.s32.totalorder %v2615_v0, %v2504_v48  ;;  %vm434_vm14 = vcmp.eq.s32.totalorder %v2615_v0, %v2598_v27 }
 0x131   :  { %v4169_v42 = vsel %vm2800_vm1, 4294967295, %v4168_v42  ;;  %vm447_vm6 = vmor %vm4171_vm9, %vm4170_vm13  ;;  %v465_v14 = vpop.permute.xlu1 %464  ;;  %v468_v47 = vpop.permute.xlu0 %467  ;;  %vm4175_vm1 = vcmp.eq.s32.totalorder %v2615_v0, %v2592_v33  ;;  %v4182_v33 = vld [vmem:[#allocation48_spill] sm:$0xff]  ;;  %vm370_vm9 = vcmp.eq.s32.totalorder %v2615_v0, %v2548_v11  ;;  %v4202_v11 = vmov 0 }
 0x132   :  { %vm2819_vm7 = vmor %vm2675_vm4, %vm4172_vm8  ;;  %vm511_vm13 = vcmp.eq.s32.totalorder %v2615_v0, %v465_v14  ;;  %vm512_vm4 = vcmp.eq.s32.totalorder %v2615_v0, %v468_v47  ;;  %vm4178_vm8 = vcmp.eq.s32.totalorder %v2615_v0, %v2472_v63 }
 0x133   :  { %v4174_v2 = vsel %vm2819_vm7, 4294967295, %v4173_v2  ;;  %vm2828_vm15 = vmor %vm368_vm5, %vm4175_vm1  ;;  %vm187_vm5 = vcmp.eq.s32.totalorder %v2615_v0, %v4182_v33  ;;  %vm4200_vm1 = vnez %v4154_v56  ;;  %v4245_v33 = vld [vmem:[#allocation53_spill] sm:$0xff] }
 0x134   :  { %vm2842_vm7 = vmor %vm4179_vm12, %vm4178_vm8  ;;  %vm4185_vm12 = vcmp.eq.s32.totalorder %v2615_v0, %v4148_v54  ;;  %815 = vperm.xlu1 %2035, %v4191_v26   ;;  %602 = vperm.xlu0 %2050, %v2220_v16   ;;  %v2928_v27 = vsel %vm4200_vm1, 1.0, %v4061_v49  ;;  %vm4204_vm1 = vnez %v4163_v61  ;;  %v4249_v26 = vld [vmem:[#allocation25_spill] sm:$0xff] }
 0x135   :  { %vm527_vm10 = vmor %vm447_vm6, %vm511_vm13  ;;  %vm4188_vm6 = vcmp.eq.s32.totalorder %v2615_v0, %v2510_v43  ;;  %vm369_vm13 = vcmp.eq.s32.totalorder %v2615_v0, %v2546_v20  ;;  %v471_v20 = vpop.permute.xlu1 %470  ;;  %v474_v40 = vpop.permute.xlu0 %473 }
 0x136   :  { %vm2860_vm8 = vmor %vm4185_vm12, %vm4184_vm0  ;;  %v543_v22 = vsel %vm527_vm10, 1.0, %v4061_v49  ;;  %vm4201_vm10 = vcmp.eq.s32.totalorder %v2615_v0, %v4156_v57  ;;  %v4278_v57 = vld [vmem:[#allocation59_spill] sm:$0xff] }
 0x137   :  { %vm2879_vm0 = vmor %vm2693_vm11, %vm4188_vm6  ;;  %vm4193_vm11 = vnez %v4141_v50  ;;  %v1039_v28 = vsub.f32 %v2872_v3, %v543_v22  ;;  %v2947_v50 = vsel %vm4204_vm1, 1.0, %v4061_v49  ;;  %vm4210_vm1 = vcmp.eq.s32.totalorder %v2615_v0, %v4166_v62  ;;  %v4236_v62 = vld [vmem:[#allocation56_spill] sm:$0xff] }
 0x138   :  { %vm528_vm3 = vmor %vm2828_vm15, %vm512_vm4  ;;  %vm4196_vm15 = vcmp.eq.s32.totalorder %v2615_v0, %v2596_v29  ;;  %876 = vperm.xlu1 %2035, %v4209_v52   ;;  %624 = vperm.xlu0 %2050, %v2228_v18   ;;  %v4218_v18 = vld [vmem:[#allocation51_spill] sm:$0xff] }
 0x139   :  { %vm2895_vm12 = vmor %vm4193_vm11, %vm4192_vm2  ;;  %v544_v16 = vsel %vm528_vm3, 1.0, %v4061_v49  ;;  %vm514_vm3 = vcmp.eq.s32.totalorder %v2615_v0, %v474_v40  ;;  %v477_v56 = vpop.permute.xlu1 %476  ;;  %v4256_v40 = vld [vmem:[#allocation58_spill] sm:$0xff] }
 0x13a   :  { %vm449_vm4 = vmor %vm369_vm13, %vm4196_vm15  ;;  %vm513_vm13 = vcmp.eq.s32.totalorder %v2615_v0, %v471_v20  ;;  %v1040_v29 = vsub.f32 %v2867_v9, %v544_v16  ;;  %vm4205_vm15 = vcmp.eq.s32.totalorder %v2615_v0, %v2516_v1  ;;  %v4212_v1 = vmov 0 }
 0x13b   :  { %vm2914_vm2 = vmor %vm370_vm9, %vm434_vm14  ;;  %v3117_v19 = vsel %vm2895_vm12, 1.0, %v4061_v49 }
 0x13c   :  { %vm529_vm11 = vmor %vm449_vm4, %vm513_vm13  ;;  %vm4206_vm4 = vnez %v4151_v55  ;;  %v1055_v53 = vpack.c.bf16 %v1040_v29, %v1039_v28  ;;  %2036 = vset.pattern.permute.xlu1 %v4125_v7  ;;  %v4257_v28 = vld [vmem:[#allocation43_spill] sm:$0xff] }
 0x13d   :  { %vm2940_vm6 = vmor %vm4201_vm10, %vm187_vm5  ;;  %vm371_vm5 = vcmp.eq.s32.totalorder %v2615_v0, %v2552_v24  ;;  %v545_v12 = vsel %vm529_vm11, 1.0, %v4061_v49  ;;  %vm4214_vm11 = vcmp.eq.s32.totalorder %v2615_v0, %v2518_v39  ;;  %v4216_v24 = vmov 0  ;;  %716 = vperm.xlu1 %2036, %v4249_v26   ;;  %v483_v63 = vpop.permute.xlu1 %482 }
 0x13e   :  { %v4203_v11 = vsel %vm2940_vm6, 4294967295, %v4202_v11  ;;  %vm2954_vm13 = vmor %vm4206_vm4, %vm4205_vm15  ;;  %vm4211_vm15 = vcmp.eq.s32.totalorder %v2615_v0, %v4155_v38  ;;  %v1041_v39 = vsub.f32 %v2947_v50, %v545_v12  ;;  %v480_v38 = vpop.permute.xlu0 %479  ;;  %vm4232_vm6 = vnez %v4169_v42  ;;  %v4237_v42 = vld [vmem:[#allocation10_spill] sm:$0xff]  ;;  %v4259_v12 = vld [vmem:[#allocation44_spill] sm:$0xff] }
 0x13f   :  { %v4208_v44 = vsel %vm2954_vm13, 4294967295, %v4207_v44  ;;  %vm530_vm10 = vmor %vm2914_vm2, %vm514_vm3  ;;  %vm4215_vm2 = vnez %v4160_v46  ;;  %vm516_vm14 = vcmp.eq.s32.totalorder %v2615_v0, %v480_v38  ;;  %v4227_v46 = vld [vmem:[#allocation41_spill] sm:$0xff]  ;;  %v3033_v61 = vsel %vm4232_vm6, 1.0, %v4061_v49  ;;  %630 = vperm.xlu0 %2050, %v4237_v42  }
 0x140   :  { %vm2971_vm4 = vmor %vm4211_vm15, %vm4210_vm1  ;;  %vm4219_vm1 = vcmp.eq.s32.totalorder %v2615_v0, %v2602_v41  ;;  %v546_v55 = vsel %vm530_vm10, 1.0, %v4061_v49  ;;  %vm4226_vm10 = vcmask 195584   ;;  %vm4238_vm6 = vcmp.eq.s32.totalorder %v2615_v0, %v4183_v58  ;;  %v4276_v38 = vld [vmem:[#allocation45_spill] sm:$0xff] }
 0x141   :  { %v4213_v1 = vsel %vm2971_vm4, 4294967295, %v4212_v1  ;;  %vm2980_vm3 = vmor %vm4215_vm2, %vm4214_vm11  ;;  %vm4222_vm11 = vcmp.eq.s32.totalorder %v2615_v0, %v2604_v23  ;;  %vm4223_vm2 = vcmp.eq.s32.totalorder %v2615_v0, %v2554_v13  ;;  %v1042_v41 = vsub.f32 %v2928_v27, %v546_v55  ;;  %1954 = vmatprep.mubr.msk.bf16.mxu0 %vm4226_vm10, %v1055_v53  ;;  %v4228_v23 = vld [vmem:[#allocation42_spill] sm:$0xff]  ;;  %v4264_v53 = vld [vmem:[#allocation55_spill] sm:$0xff]  ;;  %2037 = vset.pattern.permute.xlu1 %v4120_v5  ;;  %v489_v54 = vpop.permute.xlu1 %488 }
 0x142   :  { %v4217_v24 = vsel %vm2980_vm3, 4294967295, %v4216_v24  ;;  %vm2991_vm15 = vmor %vm371_vm5, %vm4219_vm1  ;;  %vm515_vm1 = vcmp.eq.s32.totalorder %v2615_v0, %v477_v56  ;;  %vm110_vm3 = vcmp.eq.s32.totalorder %v2615_v0, %v4227_v46  ;;  %vm4229_vm10 = vcmp.eq.s32.totalorder %v2615_v0, %v4199_v10  ;;  %v486_v16 = vpop.permute.xlu0 %485  ;;  %818 = vperm.xlu1 %2037, %v2172_v8   ;;  %v4279_v46 = vld [vmem:[#allocation13_spill] sm:$0xff] }
 0x143   :  { %vm3003_vm9 = vmor %vm4223_vm2, %vm4222_vm11  ;;  %vm109_vm11 = vcmp.eq.s32.totalorder %v2615_v0, %v4228_v23  ;;  %vm4233_vm2 = vcmp.eq.s32.totalorder %v2615_v0, %v2522_v35  ;;  %v1056_v14 = vpack.c.bf16 %v1042_v41, %v1041_v39  ;;  %636 = vperm.xlu0 %2050, %v4209_v52   ;;  %vm4261_vm12 = vnez %v4203_v11  ;;  %v4282_v23 = vld [vmem:[#allocation60_spill] sm:$0xff] }
 0x144   :  { %vm531_vm13 = vmor %vm2991_vm15, %vm515_vm1  ;;  %vm373_vm15 = vcmp.eq.s32.totalorder %v2615_v0, %v4236_v62  ;;  %v4296_v52 = vld [vmem:[#allocation64_spill] sm:$0xff] }
 0x145   :  { %vm3026_vm4 = vmor %vm109_vm11, %vm4229_vm10  ;;  %v547_v47 = vsel %vm531_vm13, 1.0, %v4061_v49  ;;  %vm4241_vm11 = vnez %v4174_v2  ;;  %vm4242_vm13 = vcmp.eq.s32.totalorder %v2615_v0, %v4218_v18  ;;  %vm4251_vm10 = vcmp.eq.s32.totalorder %v2615_v0, %v2560_v15  ;;  %v4255_v15 = vld [vmem:[#allocation52_spill] sm:$0xff]  ;;  %v495_v13 = vpop.permute.xlu1 %494 }
 0x146   :  { %vm3040_vm5 = vmor %vm2842_vm7, %vm4233_vm2  ;;  %v3061_v25 = vsel %vm4241_vm11, 1.0, %v4061_v49  ;;  %v1043_v2 = vsub.f32 %v3033_v61, %v547_v47  ;;  %vm4254_vm11 = vcmask 195584   ;;  %v492_v39 = vpop.permute.xlu0 %491 }
 0x147   :  { %vm532_vm1 = vmor %vm3003_vm9, %vm516_vm14  ;;  %vm283_vm9 = vcmp.eq.s32.totalorder %v2615_v0, %v4245_v33  ;;  %1955 = vmatmul.mubr.msk.bf16.vlgmr.msra.gmra.mrb[0].mxu0 %vm4254_vm11, %v1056_v14  ;;  %642 = vperm.xlu0 %2050, %v4279_v46   ;;  %v4290_v33 = vld [vmem:[#allocation9_spill] sm:$0xff]  ;;  %v3239_v35 = vsel %vm3040_vm5, 1.0, %v4061_v49 }
 0x148   :  { %vm3054_vm7 = vmor %vm110_vm3, %vm4238_vm6  ;;  %vm4246_vm3 = vcmp.eq.s32.totalorder %v2615_v0, %v2609_v31  ;;  %v548_v22 = vsel %vm532_vm1, 1.0, %v4061_v49  ;;  %vm517_vm1 = vcmp.eq.s32.totalorder %v2615_v0, %v483_v63  ;;  %1991 = vmatpush3.bf16.msra.mxu0 %v4257_v28  ;;  %821 = vperm.xlu1 %2037, %v4290_v33  }
 0x149   :  { %vm3068_vm14 = vmor %vm2860_vm8, %vm4242_vm13  ;;  %vm4250_vm8 = vcmp.eq.s32.totalorder %v2615_v0, %v2611_v17  ;;  %v1044_v20 = vsub.f32 %v3061_v25, %v548_v22  ;;  %vm518_vm13 = vcmp.eq.s32.totalorder %v2615_v0, %v486_v16  ;;  %v3103_v17 = vsel %vm2879_vm0, 1.0, %v4061_v49  ;;  %v4293_v16 = vld [vmem:[#allocation62_spill] sm:$0xff] }
 0x14a   :  { %vm3077_vm2 = vmor %vm373_vm15, %vm4246_vm3  ;;  %vm284_vm3 = vcmp.eq.s32.totalorder %v2615_v0, %v4255_v15  ;;  %vm375_vm0 = vcmp.eq.s32.totalorder %v2615_v0, %v4258_v34  ;;  %v498_v47 = vpop.permute.xlu0 %497  ;;  %vm380_vm5 = vcmp.eq.s32.totalorder %v2615_v0, %v4293_v16  ;;  %v4311_v16 = vld [vmem:[#allocation20_spill] sm:$0xff] }
 0x14b   :  { %vm3090_vm6 = vmor %vm4251_vm10, %vm4250_vm8  ;;  %vm376_vm8 = vcmp.eq.s32.totalorder %v2615_v0, %v4256_v40  ;;  %vm440_vm10 = vcmp.eq.s32.totalorder %v2615_v0, %v2620_v37  ;;  %v1057_v29 = vpack.c.bf16 %v1044_v20, %v1043_v2  ;;  %v4291_v2 = vld [vmem:[#allocation61_spill] sm:$0xff]  ;;  %707 = vperm.xlu0 %2050, %v4292_v59   ;;  %v501_v20 = vpop.permute.xlu1 %500 }
 0x14c   :  { %vm533_vm15 = vmor %vm3077_vm2, %vm517_vm1  ;;  %vm4260_vm2 = vcmask 1043456  }
 0x14d   :  { %v549_v10 = vsel %vm533_vm15, 1.0, %v4061_v49  ;;  %vm534_vm11 = vmor %vm3090_vm6, %vm518_vm13  ;;  %2017 = vmatprep.subr.msk.bf16.mxu0 %vm4260_vm2, %v4259_v12  ;;  %vm285_vm15 = vcmp.eq.s32.totalorder %v2615_v0, %v4264_v53  ;;  %vm4265_vm6 = vcmp.eq.s32.totalorder %v2615_v0, %v2618_v45  ;;  %v4299_v45 = vld [vmem:[#allocation24_spill] sm:$0xff] }
 0x14e   :  { %vm3132_vm1 = vmor %vm4261_vm12, %vm283_vm9  ;;  %v1045_v18 = vsub.f32 %v3117_v19, %v549_v10  ;;  %v550_v11 = vsel %vm534_vm11, 1.0, %v4061_v49  ;;  %vm4268_vm9 = vnez %v4213_v1  ;;  %vm519_vm12 = vcmp.eq.s32.totalorder %v2615_v0, %v489_v54  ;;  %v4275_v1 = vld [vmem:[#allocation54_spill] sm:$0xff]  ;;  %1993 = vmatpush3.bf16.msra.mxu0 %v4276_v38  ;;  %v504_v15 = vpop.permute.xlu0 %503 }
 0x14f   :  { %vm3141_vm13 = vmor %vm375_vm0, %vm4265_vm6  ;;  %v1046_v56 = vsub.f32 %v3103_v17, %v550_v11  ;;  %vm4273_vm6 = vcmask 195584   ;;  %v3276_v34 = vsel %vm3132_vm1, 1.0, %v4061_v49  ;;  %713 = vperm.xlu0 %2050, %v4164_v60   ;;  %v507_v11 = vpop.permute.xlu1 %506 }
 0x150   :  { %vm3155_vm0 = vmor %vm4268_vm9, %vm284_vm3  ;;  %1958 = vmatprep.mubr.msk.bf16.mxu0 %vm4273_vm6, %v1057_v29  ;;  %vm520_vm3 = vcmp.eq.s32.totalorder %v2615_v0, %v492_v39  ;;  %vm4274_vm9 = vnez %v4208_v44  ;;  %vm4277_vm6 = vnez %v4217_v24 }
 0x151   :  { %vm3165_vm11 = vmor %vm376_vm8, %vm440_vm10  ;;  %v3177_v37 = vsel %vm4274_vm9, 1.0, %v4061_v49  ;;  %vm442_vm10 = vcmp.eq.s32.totalorder %v2615_v0, %v2642_v6  ;;  %v3189_v8 = vsel %vm4277_vm6, 1.0, %v4061_v49  ;;  %vm377_vm9 = vcmp.eq.s32.totalorder %v2615_v0, %v4278_v57 }
 0x152   :  { %vm535_vm2 = vmor %vm3141_vm13, %vm519_vm12  ;;  %v1058_v44 = vpack.c.bf16 %v1046_v56, %v1045_v18  ;;  %vm378_vm12 = vcmp.eq.s32.totalorder %v2615_v0, %v4282_v23  ;;  %v3248_v6 = vsel %vm3068_vm14, 1.0, %v4061_v49  ;;  %vm445_vm14 = vcmp.eq.s32.totalorder %v2615_v0, %v2722_v51  ;;  %v510_v54 = vpop.permute.xlu0 %509  ;;  %v4306_v23 = vld [vmem:[#allocation15_spill] sm:$0xff] }
 0x153   :  { %v551_v41 = vsel %vm535_vm2, 1.0, %v4061_v49  ;;  %vm536_vm8 = vmor %vm3165_vm11, %vm520_vm3  ;;  %vm4283_vm2 = vcmp.eq.s32.totalorder %v2615_v0, %v2640_v4  ;;  %vm443_vm11 = vcmp.eq.s32.totalorder %v2615_v0, %v2681_v30  ;;  %v4294_v30 = vld [vmem:[#allocation12_spill] sm:$0xff]  ;;  %v3285_v53 = vsel %vm3155_vm0, 1.0, %v4061_v49  ;;  %719 = vperm.xlu0 %2050, %v4299_v45   ;;  %v4309_v4 = vld [vmem:[#allocation14_spill] sm:$0xff] }
 0x154   :  { %vm3202_vm13 = vmor %vm3026_vm4, %vm285_vm15  ;;  %v552_v14 = vsel %vm536_vm8, 1.0, %v4061_v49  ;;  %v1047_v42 = vsub.f32 %v3189_v8, %v551_v41  ;;  %vm4286_vm4 = vcmp.eq.s32.totalorder %v2615_v0, %v4275_v1  ;;  %vm4289_vm8 = vcmask 195584   ;;  %885 = vperm.xlu1 %2037, %v4294_v30   ;;  %v3322_v1 = vpop.permute.xlu1 %560  ;;  %v4304_v41 = vld [vmem:[#allocation26_spill] sm:$0xff]  ;;  %v4313_v30 = vld [vmem:[#allocation17_spill] sm:$0xff] }
 0x155   :  { %vm3211_vm6 = vmor %vm377_vm9, %vm4283_vm2  ;;  %vm521_vm9 = vcmp.eq.s32.totalorder %v2615_v0, %v495_v13  ;;  %1959 = vmatmul.mubr.msk.bf16.gmra.mrb[4].mxu0 %vm4289_vm8, %v1058_v44  ;;  %vm522_vm2 = vcmp.eq.s32.totalorder %v2615_v0, %v498_v47  ;;  %v1048_v58 = vsub.f32 %v3177_v37, %v552_v14  ;;  %vm525_vm0 = vcmp.eq.s32.totalorder %v2615_v0, %v507_v11 }
 0x156   :  { %vm3224_vm15 = vmor %vm3054_vm7, %vm4286_vm4  ;;  %vm444_vm7 = vcmp.eq.s32.totalorder %v2615_v0, %v2683_v32  ;;  %v4295_v32 = vld [vmem:[#allocation63_spill] sm:$0xff]  ;;  %v3306_v51 = vsel %vm3202_vm13, 1.0, %v4061_v49  ;;  %v3324_v57 = vpop.permute.xlu0 %800 }
 0x157   :  { %vm458_vm3 = vmor %vm378_vm12, %vm442_vm10  ;;  %vm379_vm12 = vcmp.eq.s32.totalorder %v2615_v0, %v4291_v2  ;;  %v1059_v63 = vpack.c.bf16 %v1048_v58, %v1047_v42  ;;  %4298 = vst [vmem:[#allocation36_spill] sm:$0xff] %v3306_v51  ;;  %725 = vperm.xlu0 %2050, %v4304_v41   ;;  %v4308_v42 = vld [vmem:[#allocation30_spill] sm:$0xff]  ;;  %v4310_v2 = vld [vmem:[#allocation19_spill] sm:$0xff] }
 0x158   :  { %vm537_vm10 = vmor %vm3211_vm6, %vm521_vm9  ;;  %vm523_vm9 = vcmp.eq.s32.totalorder %v2615_v0, %v501_v20  ;;  %956 = vperm.xlu1 %2037, %v4249_v26   ;;  %v3315_v26 = vsel %vm3224_vm15, 1.0, %v4061_v49  ;;  %v3330_v46 = vpop.permute.xlu1 %566  ;;  %v4312_v20 = vld [vmem:[#allocation34_spill] sm:$0xff] }
 0x159   :  { %v553_v22 = vsel %vm537_vm10, 1.0, %v4061_v49  ;;  %vm538_vm4 = vmor %vm458_vm3, %vm522_vm2  ;;  %1962 = vmatprep.mubr.msk.bf16.mxu1 %vm4289_vm8, %v1059_v63  ;;  %vm446_vm2 = vcmp.eq.s32.totalorder %v2615_v0, %v2724_v36  ;;  %4301 = vst [vmem:[#allocation37_spill] sm:$0xff] %v3315_v26 }
 0x15a   :  { %vm459_vm6 = vmor %vm379_vm12, %vm443_vm11  ;;  %v1049_v48 = vsub.f32 %v3248_v6, %v553_v22  ;;  %v554_v31 = vsel %vm538_vm4, 1.0, %v4061_v49  ;;  %vm524_vm11 = vcmp.eq.s32.totalorder %v2615_v0, %v504_v15  ;;  %vm382_vm4 = vcmp.eq.s32.totalorder %v2615_v0, %v4296_v52  ;;  %v3332_v24 = vpop.permute.xlu0 %867  ;;  %v2056_v22 = vld [vmem:[%s3988_s1 + $0x48] sm:$0xff] }
 0x15b   :  { %vm460_vm3 = vmor %vm380_vm5, %vm444_vm7  ;;  %v1050_v40 = vsub.f32 %v3239_v35, %v554_v31  ;;  %vm381_vm7 = vcmp.eq.s32.totalorder %v2615_v0, %v4295_v32  ;;  %648 = vperm.xlu0 %2050, %v4306_v23  }
 0x15c   :  { %vm539_vm10 = vmor %vm459_vm6, %vm523_vm9  ;;  %2038 = vset.pattern.permute.xlu1 %v4125_v7  ;;  %v3337_v62 = vpop.permute.xlu1 %569 }
 0x15d   :  { %v1060_v29 = vpack.c.bf16 %v1050_v40, %v1049_v48  ;;  %v555_v10 = vsel %vm539_vm10, 1.0, %v4061_v49  ;;  %vm540_vm12 = vmor %vm460_vm3, %vm524_vm11  ;;  %vm526_vm3 = vcmp.eq.s32.totalorder %v2615_v0, %v510_v54 }
 0x15e   :  { %vm461_vm1 = vmor %vm381_vm7, %vm445_vm14  ;;  %v1051_v43 = vsub.f32 %v3276_v34, %v555_v10  ;;  %v556_v18 = vsel %vm540_vm12, 1.0, %v4061_v49  ;;  %v3339_v14 = vpop.permute.xlu0 %870  ;;  %v4315_v10 = vld [vmem:[#allocation29_spill] sm:$0xff] }
 0x15f   :  { %vm462_vm5 = vmor %vm382_vm4, %vm446_vm2  ;;  %v1052_v60 = vsub.f32 %v3285_v53, %v556_v18  ;;  %v4316_v18 = vld [vmem:[#allocation28_spill] sm:$0xff]  ;;  %vm912_vm2 = vcmp.eq.s32.totalorder %v2615_v0, %v3332_v24 }
 0x160   :  { %vm4297_vm6 = vmmov %vm4289_vm8  ;;  %vm4300_vm8 = vcmask 1043456   ;;  %v3343_v13 = vpop.permute.xlu1 %575 }
 0x161   :  { %1963 = vmatmul.mubr.msk.bf16.vlgmr.msra.gmra.mrb[0].mxu1 %vm4297_vm6, %v1060_v29  ;;  %vm541_vm14 = vmor %vm461_vm1, %vm525_vm0  ;;  %v1061_v36 = vpack.c.bf16 %v1052_v60, %v1051_v43  ;;  %v2057_v60 = vld [vmem:[%s3988_s1 + $0x58] sm:$0xff]  ;;  %vm847_vm1 = vcmp.eq.s32.totalorder %v2615_v0, %v3324_v57 }
 0x162   :  { %1971 = vmatpush3.bf16.msra.mxu1 %v4257_v28  ;;  %v557_v39 = vsel %vm541_vm14, 1.0, %v4061_v49  ;;  %vm542_vm9 = vmor %vm462_vm5, %vm526_vm3  ;;  %v3345_v47 = vpop.permute.xlu0 %947 }
 0x163   :  { %2016 = vmatprep.subr.msk.bf16.mxu1 %vm4300_vm8, %v4259_v12  ;;  %v1053_v28 = vsub.f32 %v3306_v51, %v557_v39  ;;  %v558_v55 = vsel %vm542_vm9, 1.0, %v4061_v49  ;;  %vm4302_vm13 = vmmov %vm4297_vm6  ;;  %v4303_v12 = vld [vmem:[#allocation27_spill] sm:$0xff]  ;;  %vm992_vm7 = vcmp.eq.s32.totalorder %v2615_v0, %v3345_v47  ;;  %vm913_vm9 = vcmp.eq.s32.totalorder %v2615_v0, %v3339_v14 }
 0x164   :  { %v1054_v56 = vsub.f32 %v3315_v26, %v558_v55  ;;  %1966 = vmatprep.mubr.msk.bf16.mxu1 %vm4302_vm13, %v1061_v36  ;;  %722 = vperm.xlu1 %2038, %v4303_v12   ;;  %vm4305_vm15 = vmmov %vm4297_vm6  ;;  %v3350_v33 = vpop.permute.xlu1 %581  ;;  %v2059_v14 = vld [vmem:[%s3988_s1 + $0x78] sm:$0xff] }
 0x165   :  { %vm4324_vm14 = vmmov %vm4302_vm13 }
 0x166   :  { %1973 = vmatpush3.bf16.msra.mxu1 %v4276_v38  ;;  %v1062_v44 = vpack.c.bf16 %v1054_v56, %v1053_v28  ;;  %v4307_v38 = vld [vmem:[#allocation16_spill] sm:$0xff]  ;;  %v3352_v58 = vpop.permute.xlu0 %812 }
 0x167   :  { %657 = vperm.xlu0 %2050, %v4307_v38  }
 0x168   :  { %2039 = vset.pattern.permute.xlu1 %v4120_v5  ;;  %v3359_v59 = vpop.permute.xlu1 %587 }
 0x169   :  { %1967 = vmatmul.mubr.msk.bf16.gmra.mrb[4].mxu1 %vm4305_vm15, %v1062_v44  ;;  %962 = vperm.xlu1 %2039, %v4303_v12   ;;  %v4318_v12 = vld [vmem:[#allocation31_spill] sm:$0xff] }
 0x16a   :  { %v3361_v63 = vpop.permute.xlu0 %879 }
 0x16b   :  { %737 = vperm.xlu0 %2050, %v4308_v42  }
 0x16c   :  { %v3365_v48 = vpop.permute.xlu1 %593 }
 0x16d   :  { %965 = vperm.xlu1 %2039, %v4304_v41  }
 0x16e   :  { %v3367_v31 = vpop.permute.xlu0 %882 }
 0x16f   :  { %660 = vperm.xlu0 %2050, %v4310_v2  }
 0x170   :  { %v3371_v15 = vpop.permute.xlu1 %599 }
 0x171   :  { %2040 = vset.pattern.permute.xlu1 %v4125_v7 }
 0x172   :  { %651 = vperm.xlu1 %2040, %v4309_v4   ;;  %v3373_v40 = vpop.permute.xlu0 %959 }
 0x173   :  { %669 = vperm.xlu0 %2050, %v4311_v16  }
 0x174   :  { %v3377_v32 = vpop.permute.xlu1 %605 }
 0x175   :  { %4314 = vst [vmem:[#allocation38_spill] sm:$0xff] %v3377_v32 }
 0x176   :  { %2041 = vset.pattern.permute.xlu1 %v4120_v5  ;;  %v3379_v29 = vpop.permute.xlu0 %824 }
 0x177   :  { %827 = vperm.xlu1 %2041, %v2056_v22   ;;  %749 = vperm.xlu0 %2050, %v4312_v20  }
 0x178   :  { %v3382_v52 = vpop.permute.xlu1 %627 }
 0x17a   :  { %v3384_v43 = vpop.permute.xlu0 %891 }
 0x17b   :  { %888 = vperm.xlu1 %2041, %v4306_v23   ;;  %2053 = vset.pattern.permute.xlu0 %v4120_v5 }
 0x17c   :  { %v3387_v11 = vpop.permute.xlu1 %633 }
 0x17e   :  { %v3389_v54 = vpop.permute.xlu0 %830 }
 0x17f   :  { %2042 = vset.pattern.permute.xlu1 %v4125_v7 }
 0x180   :  { %654 = vperm.xlu1 %2042, %v4313_v30   ;;  %v3395_v36 = vpop.permute.xlu1 %639 }
 0x182   :  { %v3397_v39 = vpop.permute.xlu0 %897 }
 0x184   :  { %728 = vperm.xlu1 %2042, %v4315_v10   ;;  %v3400_v45 = vpop.permute.xlu1 %645 }
 0x186   :  { %v3402_v28 = vpop.permute.xlu0 %971 }
 0x188   :  { %731 = vperm.xlu1 %2042, %v4316_v18   ;;  %v804_v56 = vpop.permute.xlu1 %803 }
 0x189   :  { %vm848_vm11 = vcmp.eq.s32.totalorder %v2615_v0, %v804_v56 }
 0x18a   :  { %v3405_v55 = vpop.permute.xlu0 %836  ;;  %vm928_vm10 = vmor %vm848_vm11, %vm912_vm2 }
 0x18b   :  { %4317 = vst [vmem:[#allocation39_spill] sm:$0xff] %v3405_v55  ;;  %vm1008_vm12 = vmor %vm928_vm10, %vm992_vm7 }
 0x18c   :  { %2043 = vset.pattern.permute.xlu1 %v4120_v5  ;;  %v865_v41 = vpop.permute.xlu1 %864 }
 0x18d   :  { %833 = vperm.xlu1 %2043, %v2057_v60   ;;  %vm911_vm4 = vcmp.eq.s32.totalorder %v2615_v0, %v865_v41 }
 0x18e   :  { %v3409_v44 = vpop.permute.xlu0 %903  ;;  %vm927_vm5 = vmor %vm847_vm1, %vm911_vm4 }
 0x18f   :  { %vm4327_vm4 = vmmov %vm4324_vm14 }
 0x190   :  { %v3415_v38 = vpop.permute.xlu1 %704 }
 0x191   :  { %894 = vperm.xlu1 %2043, %v4313_v30   ;;  %v4321_v30 = vld [vmem:[#allocation18_spill] sm:$0xff] }
 0x192   :  { %v3413_v23 = vpop.permute.xlu0 %842 }
 0x193   :  { %4319 = vst [vmem:[#allocation40_spill] sm:$0xff] %v3413_v23 }
 0x195   :  { %968 = vperm.xlu1 %2043, %v4315_v10   ;;  %v807_v22 = vpop.permute.xlu1 %806 }
 0x196   :  { %v3418_v4 = vpop.permute.xlu0 %909  ;;  %vm849_vm3 = vcmp.eq.s32.totalorder %v2615_v0, %v807_v22 }
 0x197   :  { %4320 = vst [vmem:[#allocation23_spill] sm:$0xff] %v3418_v4  ;;  %vm929_vm8 = vmor %vm849_vm3, %vm913_vm9  ;;  %vm672_vm3 = vcmp.eq.s32.totalorder %v2615_v0, %v3382_v52  ;;  %vm609_vm9 = vcmp.eq.s32.totalorder %v2615_v0, %v3330_v46 }
 0x199   :  { %2044 = vset.pattern.permute.xlu1 %v4125_v7  ;;  %v810_v10 = vpop.permute.xlu1 %809 }
 0x19a   :  { %734 = vperm.xlu1 %2044, %v4318_v12   ;;  %v3421_v16 = vpop.permute.xlu0 %983  ;;  %vm850_vm2 = vcmp.eq.s32.totalorder %v2615_v0, %v810_v10 }
 0x19d   :  { %v874_v60 = vpop.permute.xlu1 %873 }
 0x19e   :  { %2045 = vset.pattern.permute.xlu1 %v4120_v5  ;;  %v3428_v18 = vpop.permute.xlu0 %563  ;;  %vm914_vm15 = vcmp.eq.s32.totalorder %v2615_v0, %v874_v60 }
 0x19f   :  { %974 = vperm.xlu1 %2045, %v4318_v12   ;;  %v1024_v12 = vsel %vm1008_vm12, 1.0, %v4061_v49  ;;  %vm930_vm10 = vmor %vm850_vm2, %vm914_vm15  ;;  %vm751_vm15 = vcmp.eq.s32.totalorder %v2615_v0, %v3415_v38  ;;  %vm916_vm2 = vcmp.eq.s32.totalorder %v2615_v0, %v3361_v63 }
 0x1a0   :  { %v1088_v41 = vsub.f32 %v2867_v9, %v1024_v12 }
 0x1a1   :  { %v945_v24 = vpop.permute.xlu1 %944 }
 0x1a2   :  { %v3436_v56 = vpop.permute.xlu0 %572  ;;  %vm991_vm0 = vcmp.eq.s32.totalorder %v2615_v0, %v945_v24  ;;  %v4323_v24 = vld [vmem:[#allocation33_spill] sm:$0xff] }
 0x1a3   :  { %977 = vperm.xlu1 %2045, %v4308_v42   ;;  %v2058_v42 = vld [vmem:[%s3988_s1 + $0x68] sm:$0xff]  ;;  %vm1007_vm6 = vmor %vm927_vm5, %vm991_vm0  ;;  %vm608_vm5 = vcmp.eq.s32.totalorder %v2615_v0, %v3428_v18  ;;  %vm607_vm0 = vcmp.eq.s32.totalorder %v2615_v0, %v3322_v1  ;;  %s1635_s1 = sld [smem:[#allocation2]] }
 0x1a4   :  { %v1023_v47 = vsel %vm1007_vm6, 1.0, %v4061_v49 }
 0x1a6   :  { %v3450_v57 = vpop.permute.xlu1 %710 }
 0x1a7   :  { %2046 = vset.pattern.permute.xlu1 %v4125_v7 }
 0x1a8   :  { %663 = vperm.xlu1 %2046, %v4321_v30   ;;  %v3443_v30 = vpop.permute.xlu0 %578 }
 0x1ab   :  { %v951_v49 = vpop.permute.xlu1 %950 }
 0x1ac   :  { %2047 = vset.pattern.permute.xlu1 %v4120_v5  ;;  %v3452_v4 = vpop.permute.xlu0 %584  ;;  %vm993_vm13 = vcmp.eq.s32.totalorder %v2615_v0, %v951_v49 }
 0x1ad   :  { %839 = vperm.xlu1 %2047, %v2058_v42   ;;  %v4322_v42 = vld [vmem:[#allocation21_spill] sm:$0xff]  ;;  %vm1009_vm11 = vmor %vm929_vm8, %vm993_vm13 }
 0x1ae   :  { %vm3495_vm8 = vmor %vm608_vm5, %vm672_vm3  ;;  %vm674_vm5 = vcmp.eq.s32.totalorder %v2615_v0, %v3387_v11 }
 0x1af   :  { %v954_v22 = vpop.permute.xlu1 %953 }
 0x1b0   :  { %v3459_v12 = vpop.permute.xlu0 %590  ;;  %vm994_vm7 = vcmp.eq.s32.totalorder %v2615_v0, %v954_v22 }
 0x1b1   :  { %900 = vperm.xlu1 %2047, %v4310_v2   ;;  %v1087_v2 = vsub.f32 %v2872_v3, %v1023_v47  ;;  %v4325_v47 = vld [vmem:[#allocation32_spill] sm:$0xff]  ;;  %vm1010_vm12 = vmor %vm930_vm10, %vm994_vm7  ;;  %vm611_vm10 = vcmp.eq.s32.totalorder %v2615_v0, %v3436_v56 }
 0x1b3   :  { %v1103_v21 = vpack.c.bf16 %v1088_v41, %v1087_v2 }
 0x1b4   :  { %v3465_v41 = vpop.permute.xlu0 %596 }
 0x1b5   :  { %2048 = vset.pattern.permute.xlu1 %v4125_v7  ;;  %1994 = vmatprep.mubr.msk.bf16.mxu0 %vm4324_vm14, %v1103_v21  ;;  %v4326_v21 = vmov 0.0  }
 0x1b6   :  { %666 = vperm.xlu1 %2048, %v4322_v42   ;;  %v1025_v2 = vsel %vm1009_vm11, 1.0, %v4326_v21  ;;  %v1026_v49 = vsel %vm1010_vm12, 1.0, %v4326_v21 }
 0x1b7   :  { %v1089_v10 = vsub.f32 %v2947_v50, %v1025_v2  ;;  %v1090_v60 = vsub.f32 %v2928_v27, %v1026_v49  ;;  %v4328_v2 = vld [vmem:[#allocation35_spill] sm:$0xff] }
 0x1b8   :  { %v3476_v23 = vpop.permute.xlu0 %602 }
 0x1b9   :  { %v1104_v51 = vpack.c.bf16 %v1090_v60, %v1089_v10 }
 0x1ba   :  { %740 = vperm.xlu1 %2048, %v4323_v24  }
 0x1bb   :  { %1995 = vmatmul.mubr.msk.bf16.vlgmr.msra.gmra.mrb[8].mxu0 %vm4327_vm4, %v1104_v51  ;;  %vm753_vm4 = vcmp.eq.s32.totalorder %v2615_v0, %v3450_v57 }
 0x1bc   :  { %v625_v26 = vpop.permute.xlu0 %624 }
 0x1bd   :  { %vm671_vm1 = vcmp.eq.s32.totalorder %v2615_v0, %v625_v26 }
 0x1be   :  { %743 = vperm.xlu1 %2048, %v4325_v47   ;;  %v816_v47 = vpop.permute.xlu1 %815  ;;  %vm687_vm14 = vmor %vm607_vm0, %vm671_vm1 }
 0x1bf   :  { %vm852_vm13 = vcmp.eq.s32.totalorder %v2615_v0, %v816_v47  ;;  %vm767_vm7 = vmor %vm687_vm14, %vm751_vm15  ;;  %vm610_vm14 = vcmp.eq.s32.totalorder %v2615_v0, %v3337_v62 }
 0x1c0   :  { %v631_v55 = vpop.permute.xlu0 %630  ;;  %vm932_vm1 = vmor %vm852_vm13, %vm916_vm2  ;;  %v783_v63 = vsel %vm767_vm7, 1.0, %v4326_v21  ;;  %vm996_vm13 = vcmp.eq.s32.totalorder %v2615_v0, %v3373_v40 }
 0x1c1   :  { %vm673_vm6 = vcmp.eq.s32.totalorder %v2615_v0, %v631_v55  ;;  %vm690_vm15 = vmor %vm610_vm14, %vm674_vm5  ;;  %v1063_v38 = vsub.f32 %v2872_v3, %v783_v63  ;;  %vm612_vm5 = vcmp.eq.s32.totalorder %v2615_v0, %v3343_v13  ;;  %vm613_vm14 = vcmp.eq.s32.totalorder %v2615_v0, %v3443_v30 }
 0x1c2   :  { %2049 = vset.pattern.permute.xlu1 %v4120_v5  ;;  %v877_v22 = vpop.permute.xlu1 %876  ;;  %vm689_vm11 = vmor %vm609_vm9, %vm673_vm6 }
 0x1c3   :  { %845 = vperm.xlu1 %2049, %v2059_v14   ;;  %vm3517_vm0 = vmor %vm689_vm11, %vm753_vm4  ;;  %vm915_vm2 = vcmp.eq.s32.totalorder %v2615_v0, %v877_v22  ;;  %vm676_vm4 = vcmp.eq.s32.totalorder %v2615_v0, %v3395_v36 }
 0x1c4   :  { %v637_v49 = vpop.permute.xlu0 %636  ;;  %vm1012_vm11 = vmor %vm932_vm1, %vm996_vm13  ;;  %v785_v18 = vsel %vm3517_vm0, 1.0, %v4326_v21  ;;  %vm4337_vm13 = vcmask 195584  }
 0x1c5   :  { %vm675_vm12 = vcmp.eq.s32.totalorder %v2615_v0, %v637_v49 }
 0x1c6   :  { %v717_v32 = vpop.permute.xlu1 %716  ;;  %vm3522_vm6 = vmor %vm611_vm10, %vm675_vm12  ;;  %vm851_vm12 = vcmp.eq.s32.totalorder %v2615_v0, %v3352_v58  ;;  %v1065_v58 = vsub.f32 %v2947_v50, %v785_v18 }
 0x1c7   :  { %906 = vperm.xlu1 %2049, %v4322_v42   ;;  %vm755_vm10 = vcmp.eq.s32.totalorder %v2615_v0, %v717_v32  ;;  %v1028_v32 = vsel %vm1012_vm11, 1.0, %v4326_v21  ;;  %vm931_vm0 = vmor %vm851_vm12, %vm915_vm2 }
 0x1c8   :  { %v3501_v26 = vpop.permute.xlu0 %642  ;;  %vm692_vm11 = vmor %vm612_vm5, %vm676_vm4 }
 0x1ca   :  { %v3489_v51 = vpop.permute.xlu1 %818 }
 0x1cb   :  { %980 = vperm.xlu1 %2049, %v4323_v24  }
 0x1cc   :  { %v708_v46 = vpop.permute.xlu0 %707 }
 0x1cd   :  { %vm752_vm3 = vcmp.eq.s32.totalorder %v2615_v0, %v708_v46 }
 0x1ce   :  { %v3511_v1 = vpop.permute.xlu1 %821  ;;  %vm768_vm9 = vmor %vm3495_vm8, %vm752_vm3  ;;  %vm678_vm3 = vcmp.eq.s32.totalorder %v2615_v0, %v3400_v45 }
 0x1cf   :  { %2051 = vset.pattern.permute.xlu1 %v4125_v7  ;;  %v784_v55 = vsel %vm768_vm9, 1.0, %v4326_v21  ;;  %vm3546_vm8 = vmor %vm3522_vm6, %vm755_vm10  ;;  %vm614_vm10 = vcmp.eq.s32.totalorder %v2615_v0, %v3350_v33 }
 0x1d0   :  { %746 = vperm.xlu1 %2051, %v4328_v2   ;;  %v1064_v62 = vsub.f32 %v2867_v9, %v784_v55  ;;  %v787_v24 = vsel %vm3546_vm8, 1.0, %v4326_v21 }
 0x1d1   :  { %v1067_v13 = vsub.f32 %v3033_v61, %v787_v24 }
 0x1d2   :  { %v1079_v9 = vpack.c.bf16 %v1064_v62, %v1063_v38 }
 0x1d3   :  { %v3532_v11 = vpop.permute.xlu1 %885 }
 0x1d4   :  { %2052 = vset.pattern.permute.xlu1 %v4120_v5  ;;  %1974 = vmatprep.mubr.msk.bf16.mxu1 %vm4337_vm13, %v1079_v9 }
 0x1d5   :  { %986 = vperm.xlu1 %2052, %v4328_v2  }
 0x1d7   :  { %v957_v3 = vpop.permute.xlu1 %956 }
 0x1d8   :  { %vm995_vm6 = vcmp.eq.s32.totalorder %v2615_v0, %v957_v3 }
 0x1d9   :  { %989 = vperm.xlu1 %2052, %v4312_v20   ;;  %v714_v20 = vpop.permute.xlu0 %713  ;;  %vm1011_vm9 = vmor %vm931_vm0, %vm995_vm6  ;;  %vm853_vm6 = vcmp.eq.s32.totalorder %v2615_v0, %v3489_v51 }
 0x1da   :  { %vm754_vm7 = vcmp.eq.s32.totalorder %v2615_v0, %v714_v20  ;;  %v1027_v14 = vsel %vm1011_vm9, 1.0, %v4326_v21 }
 0x1db   :  { %vm770_vm1 = vmor %vm690_vm15, %vm754_vm7  ;;  %vm677_vm15 = vcmp.eq.s32.totalorder %v2615_v0, %v3501_v26  ;;  %v1091_v10 = vsub.f32 %v3033_v61, %v1027_v14 }
 0x1dc   :  { %v786_v56 = vsel %vm770_vm1, 1.0, %v4326_v21  ;;  %vm694_vm7 = vmor %vm614_vm10, %vm678_vm3 }
 0x1dd   :  { %v1066_v42 = vsub.f32 %v2928_v27, %v786_v56  ;;  %v720_v57 = vpop.permute.xlu0 %719  ;;  %v1092_v27 = vsub.f32 %v3061_v25, %v1028_v32  ;;  %vm693_vm12 = vmor %vm613_vm14, %vm677_vm15  ;;  %vm917_vm14 = vcmp.eq.s32.totalorder %v2615_v0, %v3367_v31 }
 0x1de   :  { %vm756_vm2 = vcmp.eq.s32.totalorder %v2615_v0, %v720_v57  ;;  %vm4338_vm1 = vmmov %vm4337_vm13 }
 0x1df   :  { %v1080_v50 = vpack.c.bf16 %v1066_v42, %v1065_v58  ;;  %vm772_vm8 = vmor %vm692_vm11, %vm756_vm2  ;;  %v1105_v33 = vpack.c.bf16 %v1092_v27, %v1091_v10  ;;  %vm918_vm2 = vcmp.eq.s32.totalorder %v2615_v0, %v3532_v11 }
 0x1e0   :  { %v788_v60 = vsel %vm772_vm8, 1.0, %v4326_v21  ;;  %vm4339_vm9 = vmmov %vm4338_vm1  ;;  %vm854_vm8 = vcmp.eq.s32.totalorder %v2615_v0, %v3511_v1 }
 0x1e1   :  { %v1068_v36 = vsub.f32 %v3061_v25, %v788_v60  ;;  %1975 = vmatmul.mubr.msk.bf16.vlgmr.msra.gmra.mrb[8].mxu1 %vm4338_vm1, %v1080_v50  ;;  %v726_v22 = vpop.permute.xlu0 %725  ;;  %1998 = vmatprep.mubr.msk.bf16.mxu0 %vm4339_vm9, %v1105_v33  ;;  %vm4340_vm13 = vmmov %vm4338_vm1 }
 0x1e2   :  { %vm758_vm0 = vcmp.eq.s32.totalorder %v2615_v0, %v726_v22  ;;  %vm933_vm15 = vmor %vm853_vm6, %vm917_vm14  ;;  %vm615_vm6 = vcmp.eq.s32.totalorder %v2615_v0, %v3452_v4 }
 0x1e3   :  { %v723_v47 = vpop.permute.xlu1 %722  ;;  %v1081_v45 = vpack.c.bf16 %v1068_v36, %v1067_v13  ;;  %vm774_vm3 = vmor %vm694_vm7, %vm758_vm0 }
 0x1e4   :  { %vm757_vm4 = vcmp.eq.s32.totalorder %v2615_v0, %v723_v47  ;;  %v790_v25 = vsel %vm774_vm3, 1.0, %v4326_v21  ;;  %vm4341_vm7 = vmmov %vm4338_vm1 }
 0x1e5   :  { %vm773_vm5 = vmor %vm693_vm12, %vm757_vm4  ;;  %v1070_v2 = vsub.f32 %v3103_v17, %v790_v25  ;;  %1978 = vmatprep.mubr.msk.bf16.mxu1 %vm4340_vm13, %v1081_v45  ;;  %v649_v55 = vpop.permute.xlu0 %648 }
 0x1e6   :  { %v789_v61 = vsel %vm773_vm5, 1.0, %v4326_v21  ;;  %vm934_vm12 = vmor %vm854_vm8, %vm918_vm2  ;;  %vm679_vm0 = vcmp.eq.s32.totalorder %v2615_v0, %v649_v55 }
 0x1e7   :  { %v1069_v30 = vsub.f32 %v3117_v19, %v789_v61  ;;  %vm4342_vm5 = vmmov %vm4341_vm7 }
 0x1e8   :  { %v963_v49 = vpop.permute.xlu1 %962  ;;  %vm695_vm3 = vmor %vm615_vm6, %vm679_vm0 }
 0x1e9   :  { %vm997_vm11 = vcmp.eq.s32.totalorder %v2615_v0, %v963_v49  ;;  %v1082_v51 = vpack.c.bf16 %v1070_v2, %v1069_v30  ;;  %v658_v4 = vpop.permute.xlu0 %657 }
 0x1ea   :  { %vm1013_vm10 = vmor %vm933_vm15, %vm997_vm11  ;;  %vm616_vm15 = vcmp.eq.s32.totalorder %v2615_v0, %v3359_v59 }
 0x1eb   :  { %1979 = vmatmul.mubr.msk.bf16.gmra.mrb[12].mxu1 %vm4341_vm7, %v1082_v51  ;;  %v1029_v31 = vsel %vm1013_vm10, 1.0, %v4326_v21  ;;  %vm920_vm7 = vcmp.eq.s32.totalorder %v2615_v0, %v3384_v43 }
 0x1ec   :  { %v966_v7 = vpop.permute.xlu1 %965  ;;  %v1093_v5 = vsub.f32 %v3117_v19, %v1029_v31 }
 0x1ed   :  { %vm998_vm4 = vcmp.eq.s32.totalorder %v2615_v0, %v966_v7  ;;  %v738_v32 = vpop.permute.xlu0 %737 }
 0x1ee   :  { %vm1014_vm1 = vmor %vm934_vm12, %vm998_vm4 }
 0x1ef   :  { %v1030_v26 = vsel %vm1014_vm1, 1.0, %v4326_v21  ;;  %vm4343_vm4 = vmmov %vm4342_vm5  ;;  %vm1000_vm1 = vcmp.eq.s32.totalorder %v2615_v0, %v3402_v28 }
 0x1f0   :  { %v1094_v46 = vsub.f32 %v3103_v17, %v1030_v26 }
 0x1f1   :  { %v652_v63 = vpop.permute.xlu1 %651  ;;  %v661_v31 = vpop.permute.xlu0 %660 }
 0x1f2   :  { %v1106_v52 = vpack.c.bf16 %v1094_v46, %v1093_v5  ;;  %vm680_vm14 = vcmp.eq.s32.totalorder %v2615_v0, %v652_v63 }
 0x1f3   :  { %vm696_vm11 = vmor %vm616_vm15, %vm680_vm14 }
 0x1f4   :  { %1999 = vmatmul.mubr.msk.bf16.gmra.mrb[12].mxu0 %vm4342_vm5, %v1106_v52  ;;  %vm682_vm5 = vcmp.eq.s32.totalorder %v2615_v0, %v658_v4 }
 0x1f6   :  { %v828_v1 = vpop.permute.xlu1 %827 }
 0x1f7   :  { %vm856_vm8 = vcmp.eq.s32.totalorder %v2615_v0, %v828_v1 }
 0x1f8   :  { %vm936_vm12 = vmor %vm856_vm8, %vm920_vm7  ;;  %vm617_vm7 = vcmp.eq.s32.totalorder %v2615_v0, %v3459_v12 }
 0x1f9   :  { %vm1016_vm0 = vmor %vm936_vm12, %vm1000_vm1 }
 0x1fa   :  { %v889_v11 = vpop.permute.xlu1 %888  ;;  %v1032_v56 = vsel %vm1016_vm0, 1.0, %v4326_v21  ;;  %vm4344_vm0 = vcmask 195584  }
 0x1fb   :  { %vm919_vm6 = vcmp.eq.s32.totalorder %v2615_v0, %v889_v11 }
 0x1ff   :  { %v655_v38 = vpop.permute.xlu1 %654 }
 0x200   :  { %vm681_vm8 = vcmp.eq.s32.totalorder %v2615_v0, %v655_v38 }
 0x201   :  { %vm697_vm12 = vmor %vm617_vm7, %vm681_vm8 }
 0x202   :  { %vm4346_vm7 = vmmov %vm4344_vm0 }
 0x203   :  { %v729_v62 = vpop.permute.xlu1 %728 }
 0x204   :  { %vm759_vm9 = vcmp.eq.s32.totalorder %v2615_v0, %v729_v62 }
 0x205   :  { %vm775_vm13 = vmor %vm695_vm3, %vm759_vm9  ;;  %vm618_vm3 = vcmp.eq.s32.totalorder %v2615_v0, %v3365_v48  ;;  %vm855_vm9 = vcmp.eq.s32.totalorder %v2615_v0, %v3379_v29  ;;  %v1096_v48 = vsub.f32 %v3177_v37, %v1032_v56 }
 0x206   :  { %v791_v19 = vsel %vm775_vm13, 1.0, %v4326_v21  ;;  %vm698_vm14 = vmor %vm618_vm3, %vm682_vm5  ;;  %vm762_vm13 = vcmp.eq.s32.totalorder %v2615_v0, %v738_v32 }
 0x207   :  { %v732_v17 = vpop.permute.xlu1 %731  ;;  %v1071_v18 = vsub.f32 %v3189_v8, %v791_v19  ;;  %vm935_vm15 = vmor %vm855_vm9, %vm919_vm6  ;;  %vm857_vm6 = vcmp.eq.s32.totalorder %v2615_v0, %v3389_v54 }
 0x208   :  { %vm760_vm2 = vcmp.eq.s32.totalorder %v2615_v0, %v732_v17  ;;  %v670_v17 = vpop.permute.xlu0 %669 }
 0x209   :  { %vm776_vm10 = vmor %vm696_vm11, %vm760_vm2 }
 0x20a   :  { %v792_v20 = vsel %vm776_vm10, 1.0, %v4326_v21  ;;  %vm778_vm10 = vmor %vm698_vm14, %vm762_vm13 }
 0x20b   :  { %v1072_v40 = vsub.f32 %v3177_v37, %v792_v20  ;;  %v794_v42 = vsel %vm778_vm10, 1.0, %v4326_v21 }
 0x20c   :  { %v834_v9 = vpop.permute.xlu1 %833  ;;  %v1074_v37 = vsub.f32 %v3239_v35, %v794_v42 }
 0x20d   :  { %v1083_v3 = vpack.c.bf16 %v1072_v40, %v1071_v18  ;;  %vm858_vm14 = vcmp.eq.s32.totalorder %v2615_v0, %v834_v9  ;;  %v750_v40 = vpop.permute.xlu0 %749  ;;  %v4348_v9 = vld [vmem:[#allocation38_spill] sm:$0xff] }
 0x20f   :  { %1982 = vmatprep.mubr.msk.bf16.mxu1 %vm4343_vm4, %v1083_v3  ;;  %v4349_v3 = vld [vmem:[#allocation39_spill] sm:$0xff] }
 0x210   :  { %v895_v59 = vpop.permute.xlu1 %894 }
 0x211   :  { %vm921_vm5 = vcmp.eq.s32.totalorder %v2615_v0, %v895_v59 }
 0x212   :  { %vm937_vm3 = vmor %vm857_vm6, %vm921_vm5 }
 0x214   :  { %v969_v43 = vpop.permute.xlu1 %968 }
 0x215   :  { %vm999_vm11 = vcmp.eq.s32.totalorder %v2615_v0, %v969_v43 }
 0x216   :  { %vm1015_vm2 = vmor %vm935_vm15, %vm999_vm11  ;;  %vm922_vm11 = vcmp.eq.s32.totalorder %v2615_v0, %v3397_v39 }
 0x217   :  { %v1031_v28 = vsel %vm1015_vm2, 1.0, %v4326_v21  ;;  %vm4345_vm15 = vmmov %vm4344_vm0 }
 0x218   :  { %v1095_v58 = vsub.f32 %v3189_v8, %v1031_v28  ;;  %vm938_vm2 = vmor %vm858_vm14, %vm922_vm11  ;;  %vm924_vm11 = vcmp.eq.s32.totalorder %v2615_v0, %v3409_v44 }
 0x219   :  { %v735_v29 = vpop.permute.xlu1 %734 }
 0x21a   :  { %v1107_v57 = vpack.c.bf16 %v1096_v48, %v1095_v58  ;;  %vm761_vm4 = vcmp.eq.s32.totalorder %v2615_v0, %v735_v29  ;;  %v3667_v27 = vpop.f32.mrb[0].mxu0 }
 0x21b   :  { %vm777_vm1 = vmor %vm697_vm12, %vm761_vm4  ;;  %v1186_v54 = vpop.f32.mrb[1].mxu0  ;;  %vm683_vm12 = vcmp.eq.s32.totalorder %v2615_v0, %v661_v31  ;;  %vm619_vm4 = vcmp.eq.s32.totalorder %v2615_v0, %v3465_v41 }
 0x21c   :  { %v793_v24 = vsel %vm777_vm1, 1.0, %v4326_v21  ;;  %2002 = vmatprep.mubr.msk.bf16.mxu0 %vm4344_vm0, %v1107_v57  ;;  %v1491_v60 = vmul.f32 %v1186_v54, %v1186_v54  ;;  %v3671_v47 = vpop.f32.mrb[2].mxu0  ;;  %vm699_vm1 = vmor %vm619_vm4, %vm683_vm12  ;;  %v4353_v57 = vld [vmem:[#allocation40_spill] sm:$0xff] }
 0x21d   :  { %v1073_v8 = vsub.f32 %v3248_v6, %v793_v24  ;;  %v1189_v33 = vpop.f32.mrb[3].mxu0 }
 0x21e   :  { %v975_v12 = vpop.permute.xlu1 %974  ;;  %v1492_v22 = vmul.f32 %v1189_v33, %v1189_v33  ;;  %1507 = vadd.xlane.f32.xlu0 %v1491_v60 }
 0x21f   :  { %v1084_v14 = vpack.c.bf16 %v1074_v37, %v1073_v8  ;;  %vm1001_vm9 = vcmp.eq.s32.totalorder %v2615_v0, %v975_v12  ;;  %v4355_v37 = vld [vmem:[#allocation23_spill] sm:$0xff] }
 0x220   :  { %vm1017_vm13 = vmor %vm937_vm3, %vm1001_vm9  ;;  %1509 = vadd.xlane.f32.xlu1 %v1492_v22  ;;  %vm620_vm3 = vcmp.eq.s32.totalorder %v2615_v0, %v3371_v15  ;;  %v1493_v22 = vmul.f32 %v3667_v27, %v3667_v27 }
 0x221   :  { %1983 = vmatmul.mubr.msk.bf16.gmra.mrb[16].mxu1 %vm4345_vm15, %v1084_v14  ;;  %v1033_v10 = vsel %vm1017_vm13, 1.0, %v4326_v21 }
 0x222   :  { %v978_v50 = vpop.permute.xlu1 %977  ;;  %v1097_v36 = vsub.f32 %v3248_v6, %v1033_v10 }
 0x223   :  { %vm1002_vm10 = vcmp.eq.s32.totalorder %v2615_v0, %v978_v50 }
 0x224   :  { %vm1018_vm8 = vmor %vm938_vm2, %vm1002_vm10 }
 0x225   :  { %v1034_v13 = vsel %vm1018_vm8, 1.0, %v4326_v21  ;;  %vm4347_vm10 = vmmov %vm4346_vm7  ;;  %vm1004_vm8 = vcmp.eq.s32.totalorder %v2615_v0, %v3421_v16 }
 0x226   :  { %v1098_v39 = vsub.f32 %v3239_v35, %v1034_v13 }
 0x227   :  { %v664_v45 = vpop.permute.xlu1 %663 }
 0x228   :  { %v1108_v61 = vpack.c.bf16 %v1098_v39, %v1097_v36  ;;  %v3676_v30 = vpop.f32.mrb[4].mxu0  ;;  %vm684_vm0 = vcmp.eq.s32.totalorder %v2615_v0, %v664_v45 }
 0x229   :  { %v3679_v25 = vpop.f32.mrb[5].mxu0  ;;  %vm700_vm9 = vmor %vm620_vm3, %vm684_vm0 }
 0x22a   :  { %2003 = vmatmul.mubr.msk.bf16.gmra.mrb[16].mxu0 %vm4346_vm7, %v1108_v61  ;;  %v3681_v2 = vpop.f32.mrb[6].mxu0  ;;  %vm686_vm7 = vcmp.eq.s32.totalorder %v2615_v0, %v670_v17 }
 0x22b   :  { %v3683_v51 = vpop.f32.mrb[7].mxu0 }
 0x22c   :  { %v840_v49 = vpop.permute.xlu1 %839 }
 0x22d   :  { %vm860_vm15 = vcmp.eq.s32.totalorder %v2615_v0, %v840_v49 }
 0x22e   :  { %vm940_vm2 = vmor %vm860_vm15, %vm924_vm11  ;;  %vm621_vm11 = vcmp.eq.s32.totalorder %v2615_v0, %v3476_v23 }
 0x22f   :  { %vm1020_vm12 = vmor %vm940_vm2, %vm1004_vm8 }
 0x230   :  { %v901_v7 = vpop.permute.xlu1 %900  ;;  %v1036_v59 = vsel %vm1020_vm12, 1.0, %v4326_v21  ;;  %vm4350_vm12 = vcmask 195584  }
 0x231   :  { %vm923_vm4 = vcmp.eq.s32.totalorder %v2615_v0, %v901_v7  ;;  %v1100_v32 = vsub.f32 %v3285_v53, %v1036_v59  ;;  %v1497_v59 = vmul.f32 %v3676_v30, %v3676_v30  ;;  %v1498_v30 = vmul.f32 %v3681_v2, %v3681_v2 }
 0x234   :  { %v3685_v6 = vpop.f32.mrb[0].mxu1 }
 0x235   :  { %v3687_v35 = vpop.f32.mrb[1].mxu1  ;;  %v667_v46 = vpop.permute.xlu1 %666 }
 0x236   :  { %v3689_v26 = vpop.f32.mrb[2].mxu1  ;;  %vm685_vm15 = vcmp.eq.s32.totalorder %v2615_v0, %v667_v46 }
 0x237   :  { %v3691_v5 = vpop.f32.mrb[3].mxu1  ;;  %vm701_vm2 = vmor %vm621_vm11, %vm685_vm15 }
 0x239   :  { %v741_v63 = vpop.permute.xlu1 %740 }
 0x23a   :  { %vm763_vm5 = vcmp.eq.s32.totalorder %v2615_v0, %v741_v63 }
 0x23b   :  { %vm779_vm6 = vmor %vm699_vm1, %vm763_vm5  ;;  %vm622_vm1 = vcmp.eq.s32.totalorder %v2615_v0, %v4348_v9  ;;  %vm859_vm5 = vcmp.eq.s32.totalorder %v2615_v0, %v4349_v3 }
 0x23c   :  { %v3697_v52 = vpop.f32.mrb[4].mxu1  ;;  %v795_v41 = vsel %vm779_vm6, 1.0, %v4326_v21  ;;  %vm702_vm0 = vmor %vm622_vm1, %vm686_vm7  ;;  %vm766_vm6 = vcmp.eq.s32.totalorder %v2615_v0, %v750_v40 }
 0x23d   :  { %v3700_v1 = vpop.f32.mrb[5].mxu1  ;;  %v744_v38 = vpop.permute.xlu1 %743  ;;  %v1075_v19 = vsub.f32 %v3276_v34, %v795_v41  ;;  %vm939_vm3 = vmor %vm859_vm5, %vm923_vm4  ;;  %vm861_vm4 = vcmp.eq.s32.totalorder %v2615_v0, %v4353_v57  ;;  %v1500_v57 = vmul.f32 %v3691_v5, %v3691_v5 }
 0x23e   :  { %v3702_v11 = vpop.f32.mrb[6].mxu1  ;;  %vm764_vm14 = vcmp.eq.s32.totalorder %v2615_v0, %v744_v38  ;;  %v1495_v38 = vmul.f32 %v3679_v25, %v3679_v25 }
 0x23f   :  { %v3706_v55 = vpop.f32.mrb[7].mxu1  ;;  %vm780_vm13 = vmor %vm700_vm9, %vm764_vm14 }
 0x240   :  { %v796_v62 = vsel %vm780_vm13, 1.0, %v4326_v21  ;;  %vm782_vm13 = vmor %vm702_vm0, %vm766_vm6 }
 0x241   :  { %v1076_v20 = vsub.f32 %v3285_v53, %v796_v62  ;;  %v798_v28 = vsel %vm782_vm13, 1.0, %v4326_v21  ;;  %v4351_v53 = vld [vmem:[#allocation37_spill] sm:$0xff] }
 0x242   :  { %v846_v4 = vpop.permute.xlu1 %845  ;;  %v1078_v29 = vsub.f32 %v4351_v53, %v798_v28  ;;  %v1499_v28 = vmul.f32 %v3687_v35, %v3687_v35 }
 0x243   :  { %v1085_v15 = vpack.c.bf16 %v1076_v20, %v1075_v19  ;;  %vm862_vm0 = vcmp.eq.s32.totalorder %v2615_v0, %v846_v4 }
 0x245   :  { %1986 = vmatprep.mubr.msk.bf16.mxu1 %vm4347_vm10, %v1085_v15 }
 0x246   :  { %v907_v18 = vpop.permute.xlu1 %906 }
 0x247   :  { %vm925_vm7 = vcmp.eq.s32.totalorder %v2615_v0, %v907_v18  ;;  %v1494_v18 = vmul.f32 %v3671_v47, %v3671_v47 }
 0x248   :  { %vm941_vm1 = vmor %vm861_vm4, %vm925_vm7  ;;  %vm1797_vm7 = vcmask 326912   ;;  %vm1811_vm4 = vcmask 458112  }
 0x24a   :  { %v981_v44 = vpop.permute.xlu1 %980 }
 0x24b   :  { %vm1003_vm9 = vcmp.eq.s32.totalorder %v2615_v0, %v981_v44 }
 0x24c   :  { %vm1019_vm14 = vmor %vm939_vm3, %vm1003_vm9  ;;  %vm926_vm9 = vcmp.eq.s32.totalorder %v2615_v0, %v4355_v37 }
 0x24d   :  { %v1035_v16 = vsel %vm1019_vm14, 1.0, %v4326_v21  ;;  %vm4354_vm3 = vmmov %vm4350_vm12 }
 0x24e   :  { %v1099_v43 = vsub.f32 %v3276_v34, %v1035_v16  ;;  %v4352_v34 = vld [vmem:[#allocation36_spill] sm:$0xff]  ;;  %vm942_vm14 = vmor %vm862_vm0, %vm926_vm9  ;;  %vm1832_vm0 = vcmask 654912   ;;  %vm1853_vm9 = vcmask 851712  }
 0x24f   :  { %v747_v56 = vpop.permute.xlu1 %746  ;;  %vm4356_vm11 = vmmov %vm4354_vm3 }
 0x250   :  { %v1109_v48 = vpack.c.bf16 %v1100_v32, %v1099_v43  ;;  %vm765_vm10 = vcmp.eq.s32.totalorder %v2615_v0, %v747_v56  ;;  %v1496_v32 = vmul.f32 %v3683_v51, %v3683_v51 }
 0x251   :  { %vm781_vm8 = vmor %vm701_vm2, %vm765_vm10  ;;  %vm1776_vm2 = vcmask 130112   ;;  %vm1783_vm10 = vcmask 195712  }
 0x252   :  { %v797_v58 = vsel %vm781_vm8, 1.0, %v4326_v21  ;;  %2006 = vmatprep.mubr.msk.bf16.mxu0 %vm4350_vm12, %v1109_v48  ;;  %vm1790_vm8 = vcmask 261312   ;;  %vm1804_vm12 = vcmask 392512  }
 0x253   :  { %v1077_v42 = vsub.f32 %v4352_v34, %v797_v58 }
 0x254   :  { %v987_v23 = vpop.permute.xlu1 %986 }
 0x255   :  { %v1086_v24 = vpack.c.bf16 %v1078_v29, %v1077_v42  ;;  %vm1005_vm5 = vcmp.eq.s32.totalorder %v2615_v0, %v987_v23 }
 0x256   :  { %vm1021_vm6 = vmor %vm941_vm1, %vm1005_vm5  ;;  %vm1818_vm1 = vcmask 523712   ;;  %vm1825_vm5 = vcmask 589312  }
 0x257   :  { %1987 = vmatmul.mubr.msk.bf16.gmra.mrb[20].mxu1 %vm4354_vm3, %v1086_v24  ;;  %v1037_v12 = vsel %vm1021_vm6, 1.0, %v4326_v21  ;;  %vm1839_vm6 = vcmask 720512   ;;  %vm1846_vm3 = vcmask 786112  }
 0x258   :  { %v990_v8 = vpop.permute.xlu1 %989  ;;  %v1101_v50 = vsub.f32 %v4352_v34, %v1037_v12 }
 0x259   :  { %vm1006_vm13 = vcmp.eq.s32.totalorder %v2615_v0, %v990_v8 }
 0x25a   :  { %vm1022_vm15 = vmor %vm942_vm14, %vm1006_vm13  ;;  %vm1860_vm14 = vcmask 917312   ;;  %vm1867_vm13 = vcmask 982912  }
 0x25b   :  { %v1038_v14 = vsel %vm1022_vm15, 1.0, %v4326_v21  ;;  %vm1874_vm15 = vcmask 1048512  }
 0x25c   :  { %v1102_v10 = vsub.f32 %v4351_v53, %v1038_v14 }
 0x25e   :  { %v1110_v54 = vpack.c.bf16 %v1102_v10, %v1101_v50  ;;  %v1501_v50 = vmul.f32 %v3685_v6, %v3685_v6  ;;  %v1502_v10 = vmul.f32 %v3689_v26, %v3689_v26  ;;  %v1504_v26 = vmul.f32 %v3706_v55, %v3706_v55 }
 0x260   :  { %2007 = vmatmul.mubr.msk.bf16.gmra.mrb[20].mxu0 %vm4356_vm11, %v1110_v54 }
 0x28e   :  { %v1996_v60 = vpop.f32.mrb[8].mxu0 }
 0x28f   :  { %v1428_v13 = vpop.f32.mrb[9].mxu0  ;;  %v1589_v45 = vmul.f32 %v1996_v60, %v1996_v60 }
 0x290   :  { %v1587_v33 = vmul.f32 %v1428_v13, %v1428_v13  ;;  %v1997_v36 = vpop.f32.mrb[10].mxu0  ;;  %v1503_v13 = vmul.f32 %v3700_v1, %v3700_v1 }
 0x291   :  { %v1431_v39 = vpop.f32.mrb[11].mxu0  ;;  %v1590_v25 = vmul.f32 %v1997_v36, %v1997_v36 }
 0x292   :  { %1603 = vadd.xlane.f32.xlu1 %v1587_v33  ;;  %v1588_v27 = vmul.f32 %v1431_v39, %v1431_v39 }
 0x296   :  { %1511 = vadd.xlane.f32.xlu1 %v1493_v22 }
 0x29a   :  { %1607 = vadd.xlane.f32.xlu1 %v1589_v45 }
 0x2b4   :  { %v1976_v21 = vpop.f32.mrb[8].mxu1 }
 0x2b5   :  { %v1307_v61 = vpop.f32.mrb[9].mxu1  ;;  %v1541_v20 = vmul.f32 %v1976_v21, %v1976_v21 }
 0x2b6   :  { %v1539_v49 = vmul.f32 %v1307_v61, %v1307_v61  ;;  %v1977_v7 = vpop.f32.mrb[10].mxu1 }
 0x2b7   :  { %v1542_v31 = vmul.f32 %v1977_v7, %v1977_v7  ;;  %v1310_v46 = vpop.f32.mrb[11].mxu1 }
 0x2b8   :  { %1555 = vadd.xlane.f32.xlu0 %v1539_v49  ;;  %v1540_v63 = vmul.f32 %v1310_v46, %v1310_v46 }
 0x2b9   :  { %1561 = vadd.xlane.f32.xlu1 %v1542_v31 }
 0x2bc   :  { %1557 = vadd.xlane.f32.xlu0 %v1540_v63  ;;  %v1505_v63 = vmul.f32 %v3697_v52, %v3697_v52  ;;  %v3784_v52 = vstv %s1919_s4 }
 0x2bd   :  { %1515 = vadd.xlane.f32.xlu1 %v1495_v38  ;;  %v1506_v38 = vmul.f32 %v3702_v11, %v3702_v11 }
 0x2be   :  { %v1980_v41 = vpop.f32.mrb[12].mxu1 }
 0x2bf   :  { %v1323_v62 = vpop.f32.mrb[13].mxu1  ;;  %v1545_v48 = vmul.f32 %v1980_v41, %v1980_v41 }
 0x2c0   :  { %v1981_v17 = vpop.f32.mrb[14].mxu1  ;;  %1605 = vadd.xlane.f32.xlu0 %v1588_v27  ;;  %v1543_v16 = vmul.f32 %v1323_v62, %v1323_v62  ;;  %v1508_v62 = vpop.xlane.xlu0 %1507 }
 0x2c1   :  { %v1326_v19 = vpop.f32.mrb[15].mxu1  ;;  %v1546_v47 = vmul.f32 %v1981_v17, %v1981_v17  ;;  %v1510_v27 = vpop.xlane.xlu1 %1509 }
 0x2c2   :  { %v1544_v44 = vmul.f32 %v1326_v19, %v1326_v19 }
 0x2c4   :  { %1559 = vadd.xlane.f32.xlu0 %v1541_v20  ;;  %v3782_v20 = vstv %s1635_s1 }
 0x2c7   :  { %v2000_v4 = vpop.f32.mrb[12].mxu0 }
 0x2c8   :  { %v1444_v15 = vpop.f32.mrb[13].mxu0  ;;  %1513 = vadd.xlane.f32.xlu0 %v1494_v18  ;;  %v1593_v43 = vmul.f32 %v2000_v4, %v2000_v4 }
 0x2c9   :  { %v1591_v40 = vmul.f32 %v1444_v15, %v1444_v15  ;;  %v2001_v9 = vpop.f32.mrb[14].mxu0 }
 0x2ca   :  { %v1447_v3 = vpop.f32.mrb[15].mxu0  ;;  %v1594_v58 = vmul.f32 %v2001_v9, %v2001_v9 }
 0x2cb   :  { %1611 = vadd.xlane.f32.xlu1 %v1591_v40  ;;  %v1592_v56 = vmul.f32 %v1447_v3, %v1447_v3 }
 0x2cc   :  { %1609 = vadd.xlane.f32.xlu0 %v1590_v25 }
 0x2cf   :  { %1565 = vadd.xlane.f32.xlu1 %v1544_v44 }
 0x2d0   :  { %1563 = vadd.xlane.f32.xlu0 %v1543_v16 }
 0x2d3   :  { %1519 = vadd.xlane.f32.xlu1 %v1497_v59 }
 0x2d4   :  { %1517 = vadd.xlane.f32.xlu0 %v1496_v32  ;;  %v4357_v32 = vlaneseq }
 0x2d7   :  { %1615 = vadd.xlane.f32.xlu1 %v1593_v43  ;;  %v3789_v43 = vshrl.u32 %v4357_v32, 7 }
 0x2d8   :  { %1613 = vadd.xlane.f32.xlu0 %v1592_v56 }
 0x2db   :  { %1569 = vadd.xlane.f32.xlu1 %v1546_v47  ;;  %v1771_v47 = vadd.s32 4294967288, %v2615_v0 }
 0x2dc   :  { %1567 = vadd.xlane.f32.xlu0 %v1545_v48 }
 0x2df   :  { %1523 = vadd.xlane.f32.xlu1 %v1499_v28 }
 0x2e0   :  { %1521 = vadd.xlane.f32.xlu0 %v1498_v30 }
 0x2e4   :  { %1617 = vadd.xlane.f32.xlu0 %v1594_v58 }
 0x2f4   :  { %v1984_v51 = vpop.f32.mrb[16].mxu1 }
 0x2f5   :  { %v1339_v53 = vpop.f32.mrb[17].mxu1  ;;  %v1549_v14 = vmul.f32 %v1984_v51, %v1984_v51  ;;  %v1769_v51 = vsub.s32 %v2615_v0, %v3789_v43 }
 0x2f6   :  { %v1547_v29 = vmul.f32 %v1339_v53, %v1339_v53  ;;  %v1985_v34 = vpop.f32.mrb[18].mxu1  ;;  %v1774_v53 = vsub.s32 %v1771_v47, %v3789_v43 }
 0x2f7   :  { %v1342_v42 = vpop.f32.mrb[19].mxu1  ;;  %v1550_v60 = vmul.f32 %v1985_v34, %v1985_v34 }
 0x2f8   :  { %1571 = vadd.xlane.f32.xlu0 %v1547_v29  ;;  %v1548_v2 = vmul.f32 %v1342_v42, %v1342_v42  ;;  %v1778_v29 = vadd.s32 4294967280, %v2615_v0 }
 0x2fc   :  { %1525 = vadd.xlane.f32.xlu0 %v1500_v57 }
 0x2fd   :  { %v2004_v35 = vpop.f32.mrb[16].mxu0 }
 0x2fe   :  { %v1460_v23 = vpop.f32.mrb[17].mxu0  ;;  %v1597_v5 = vmul.f32 %v2004_v35, %v2004_v35 }
 0x2ff   :  { %v1595_v24 = vmul.f32 %v1460_v23, %v1460_v23  ;;  %v2005_v37 = vpop.f32.mrb[18].mxu0 }
 0x300   :  { %v1463_v8 = vpop.f32.mrb[19].mxu0  ;;  %v1598_v54 = vmul.f32 %v2005_v37, %v2005_v37 }
 0x301   :  { %v1596_v12 = vmul.f32 %v1463_v8, %v1463_v8  ;;  %1619 = vadd.xlane.f32.xlu1 %v1595_v24 }
 0x303   :  { %1621 = vadd.xlane.f32.xlu0 %v1596_v12 }
 0x305   :  { %1573 = vadd.xlane.f32.xlu1 %v1548_v2 }
 0x307   :  { %1575 = vadd.xlane.f32.xlu0 %v1549_v14  ;;  %v1781_v14 = vsub.s32 %v1778_v29, %v3789_v43 }
 0x309   :  { %1527 = vadd.xlane.f32.xlu1 %v1501_v50 }
 0x30b   :  { %1529 = vadd.xlane.f32.xlu0 %v1502_v10 }
 0x30d   :  { %1623 = vadd.xlane.f32.xlu1 %v1597_v5 }
 0x30f   :  { %1625 = vadd.xlane.f32.xlu0 %v1598_v54 }
 0x311   :  { %1577 = vadd.xlane.f32.xlu1 %v1550_v60 }
 0x315   :  { %1531 = vadd.xlane.f32.xlu1 %v1503_v13 }
 0x31f   :  { %v1604_v19 = vpop.xlane.xlu1 %1603 }
 0x323   :  { %v1512_v59 = vpop.xlane.xlu1 %1511 }
 0x327   :  { %v1608_v58 = vpop.xlane.xlu1 %1607 }
 0x32a   :  { %v1988_v33 = vpop.f32.mrb[20].mxu1 }
 0x32b   :  { %v1355_v36 = vpop.f32.mrb[21].mxu1  ;;  %v1553_v1 = vmul.f32 %v1988_v33, %v1988_v33 }
 0x32c   :  { %v1551_v39 = vmul.f32 %v1355_v36, %v1355_v36  ;;  %v1989_v6 = vpop.f32.mrb[22].mxu1 }
 0x32d   :  { %v1358_v22 = vpop.f32.mrb[23].mxu1  ;;  %v1554_v17 = vmul.f32 %v1989_v6, %v1989_v6 }
 0x32e   :  { %1579 = vadd.xlane.f32.xlu0 %v1551_v39  ;;  %v1552_v46 = vmul.f32 %v1358_v22, %v1358_v22  ;;  %v1785_v22 = vadd.s32 4294967272, %v2615_v0 }
 0x332   :  { %1533 = vadd.xlane.f32.xlu0 %v1504_v26 }
 0x333   :  { %v2008_v45 = vpop.f32.mrb[20].mxu0 }
 0x334   :  { %v1476_v21 = vpop.f32.mrb[21].mxu0  ;;  %v1601_v55 = vmul.f32 %v2008_v45, %v2008_v45 }
 0x335   :  { %v1599_v61 = vmul.f32 %v1476_v21, %v1476_v21  ;;  %v2009_v49 = vpop.f32.mrb[22].mxu0 }
 0x336   :  { %v1479_v7 = vpop.f32.mrb[23].mxu0  ;;  %v1602_v41 = vmul.f32 %v2009_v49, %v2009_v49  ;;  %v1788_v49 = vsub.s32 %v1785_v22, %v3789_v43  ;;  %v3877_v22 = vadd.s32 4294967200, %v2615_v0 }
 0x337   :  { %v1600_v31 = vmul.f32 %v1479_v7, %v1479_v7  ;;  %1627 = vadd.xlane.f32.xlu1 %v1599_v61 }
 0x339   :  { %1629 = vadd.xlane.f32.xlu0 %v1600_v31 }
 0x33b   :  { %1581 = vadd.xlane.f32.xlu1 %v1552_v46 }
 0x33d   :  { %1583 = vadd.xlane.f32.xlu0 %v1553_v1 }
 0x33f   :  { %1535 = vadd.xlane.f32.xlu1 %v1505_v63 }
 0x341   :  { %1537 = vadd.xlane.f32.xlu0 %v1506_v38 }
 0x343   :  { %1631 = vadd.xlane.f32.xlu1 %v1601_v55 }
 0x345   :  { %1633 = vadd.xlane.f32.xlu0 %v1602_v41  ;;  %v1556_v4 = vpop.xlane.xlu0 %1555 }
 0x346   :  { %v1637_v15 = vsub.f32 %v1508_v62, %v1556_v4  ;;  %v1686_v11 = vsub.f32 %v1556_v4, %v1604_v19  ;;  %v1562_v2 = vpop.xlane.xlu1 %1561 }
 0x347   :  { %1585 = vadd.xlane.f32.xlu1 %v1554_v17 }
 0x348   :  { %v1654_v18 = vadd.f32 %v3782_v20, %v1637_v15  ;;  %v1703_v40 = vadd.f32 %v3784_v52, %v1686_v11 }
 0x349   :  { %v1558_v9 = vpop.xlane.xlu0 %1557 }
 0x34a   :  { %v1670_v3 = vmax.f32 %v1654_v18, 0.0  ;;  %v1719_v25 = vmax.f32 %v1703_v40, 0.0  ;;  %v1638_v44 = vsub.f32 %v1510_v27, %v1558_v9  ;;  %v1516_v38 = vpop.xlane.xlu1 %1515 }
 0x34c   :  { %v1735_v16 = vadd.f32 %v1719_v25, %v1670_v3  ;;  %v1655_v28 = vadd.f32 %v3782_v20, %v1638_v44 }
 0x34d   :  { %v1606_v56 = vpop.xlane.xlu0 %1605 }
 0x34e   :  { %v1687_v48 = vsub.f32 %v1558_v9, %v1606_v56  ;;  %v1671_v42 = vmax.f32 %v1655_v28, 0.0  ;;  %v1770_v12 = vrot.slane %v1735_v16, %v1769_v51  ;;  %v3835_v51 = vadd.s32 4294967256, %v2615_v0 }
 0x350   :  { %v1704_v30 = vadd.f32 %v3784_v52, %v1687_v48  ;;  %v3832_v48 = vadd.s32 4294967264, %v2615_v0 }
 0x351   :  { %v1560_v34 = vpop.xlane.xlu0 %1559 }
 0x352   :  { %v1720_v57 = vmax.f32 %v1704_v30, 0.0  ;;  %v1639_v35 = vsub.f32 %v1512_v59, %v1560_v34  ;;  %v1688_v23 = vsub.f32 %v1560_v34, %v1608_v58  ;;  %v3843_v34 = vadd.s32 4294967240, %v2615_v0 }
 0x354   :  { %v1736_v24 = vadd.f32 %v1720_v57, %v1671_v42  ;;  %v1656_v37 = vadd.f32 %v3782_v20, %v1639_v35  ;;  %v1705_v8 = vadd.f32 %v3784_v52, %v1688_v23  ;;  %v3846_v42 = vadd.s32 4294967232, %v2615_v0 }
 0x355   :  { %v1514_v50 = vpop.xlane.xlu0 %1513 }
 0x356   :  { %v1775_v10 = vrot.slane %v1736_v24, %v1774_v53  ;;  %v1672_v5 = vmax.f32 %v1656_v37, 0.0  ;;  %v1721_v54 = vmax.f32 %v1705_v8, 0.0  ;;  %v1640_v60 = vsub.f32 %v1514_v50, %v1562_v2 }
 0x357   :  { %v3838_v53 = vadd.s32 4294967248, %v2615_v0  ;;  %v1795_v37 = vsub.s32 %v3832_v48, %v3789_v43 }
 0x358   :  { %v1777_v13 = vsel %vm1776_vm2, %v1775_v10, %v1770_v12  ;;  %v1737_v33 = vadd.f32 %v1721_v54, %v1672_v5  ;;  %v1657_v6 = vadd.f32 %v3782_v20, %v1640_v60  ;;  %v1612_v55 = vpop.xlane.xlu1 %1611  ;;  %v3859_v10 = vadd.s32 4294967224, %v2615_v0 }
 0x359   :  { %v1610_v36 = vpop.xlane.xlu0 %1609  ;;  %v1809_v50 = vsub.s32 %v3838_v53, %v3789_v43  ;;  %v1816_v5 = vsub.s32 %v3843_v34, %v3789_v43  ;;  %v1823_v54 = vsub.s32 %v3846_v42, %v3789_v43  ;;  %v3866_v60 = vadd.s32 4294967216, %v2615_v0 }
 0x35a   :  { %v1782_v39 = vrot.slane %v1737_v33, %v1781_v14  ;;  %v1689_v26 = vsub.f32 %v1562_v2, %v1610_v36  ;;  %v1673_v61 = vmax.f32 %v1657_v6, 0.0  ;;  %v1802_v14 = vsub.s32 %v3835_v51, %v3789_v43 }
 0x35c   :  { %v1784_v45 = vsel %vm1783_vm10, %v1782_v39, %v1777_v13  ;;  %v1706_v21 = vadd.f32 %v3784_v52, %v1689_v26  ;;  %v1566_v62 = vpop.xlane.xlu1 %1565  ;;  %v3869_v13 = vadd.s32 4294967208, %v2615_v0 }
 0x35d   :  { %v1564_v63 = vpop.xlane.xlu0 %1563 }
 0x35e   :  { %v1722_v7 = vmax.f32 %v1706_v21, 0.0  ;;  %v1641_v30 = vsub.f32 %v1516_v38, %v1564_v63  ;;  %v1690_v58 = vsub.f32 %v1564_v63, %v1612_v55 }
 0x360   :  { %v1738_v31 = vadd.f32 %v1722_v7, %v1673_v61  ;;  %v1520_v17 = vpop.xlane.xlu1 %1519  ;;  %v1658_v8 = vadd.f32 %v3782_v20, %v1641_v30  ;;  %v1707_v12 = vadd.f32 %v3784_v52, %v1690_v58  ;;  %v3881_v61 = vadd.s32 4294967192, %v2615_v0 }
 0x361   :  { %v1518_v41 = vpop.xlane.xlu0 %1517 }
 0x362   :  { %v1789_v46 = vrot.slane %v1738_v31, %v1788_v49  ;;  %v1642_v2 = vsub.f32 %v1518_v41, %v1566_v62  ;;  %v1674_v26 = vmax.f32 %v1658_v8, 0.0  ;;  %v1837_v41 = vsub.s32 %v3866_v60, %v3789_v43 }
 0x364   :  { %v3805_v1 = vsel %vm1790_vm8, %v1789_v46, %v1784_v45  ;;  %v1616_v4 = vpop.xlane.xlu1 %1615  ;;  %v1723_v45 = vmax.f32 %v1707_v12, 0.0  ;;  %v1659_v49 = vadd.f32 %v3782_v20, %v1642_v2  ;;  %v1830_v46 = vsub.s32 %v3859_v10, %v3789_v43 }
 0x365   :  { %v1614_v27 = vpop.xlane.xlu0 %1613 }
 0x366   :  { %v1691_v57 = vsub.f32 %v1566_v62, %v1614_v27  ;;  %v1844_v62 = vsub.s32 %v3869_v13, %v3789_v43 }
 0x368   :  { %v3807_v11 = vpop.xlane.xlu1 %1569  ;;  %v1708_v33 = vadd.f32 %v3784_v52, %v1691_v57 }
 0x369   :  { %v1568_v19 = vpop.xlane.xlu0 %1567 }
 0x36a   :  { %v1643_v35 = vsub.f32 %v1520_v17, %v1568_v19  ;;  %v1692_v23 = vsub.f32 %v1568_v19, %v1616_v4  ;;  %v1724_v27 = vmax.f32 %v1708_v33, 0.0  ;;  %v1851_v4 = vsub.s32 %v3877_v22, %v3789_v43 }
 0x36c   :  { %v3813_v9 = vpop.xlane.xlu1 %1523  ;;  %v1660_v36 = vadd.f32 %v3782_v20, %v1643_v35  ;;  %v1709_v39 = vadd.f32 %v3784_v52, %v1692_v23 }
 0x36d   :  { %v1522_v15 = vpop.xlane.xlu0 %1521 }
 0x36e   :  { %v1644_v21 = vsub.f32 %v1522_v15, %v3807_v11  ;;  %v1676_v17 = vmax.f32 %v1660_v36, 0.0  ;;  %v1725_v19 = vmax.f32 %v1709_v39, 0.0 }
 0x370   :  { %v1741_v12 = vadd.f32 %v1725_v19, %v1676_v17 }
 0x371   :  { %v3809_v18 = vpop.xlane.xlu0 %1617 }
 0x372   :  { %v1693_v7 = vsub.f32 %v3807_v11, %v3809_v18  ;;  %v1739_v11 = vadd.f32 %v1723_v45, %v1674_v26  ;;  %v1661_v18 = vadd.f32 %v3782_v20, %v1644_v21 }
 0x374   :  { %v1677_v36 = vmax.f32 %v1661_v18, 0.0  ;;  %v1810_v18 = vrot.slane %v1741_v12, %v1809_v50 }
 0x385   :  { %v3811_v40 = vpop.xlane.xlu0 %1571 }
 0x389   :  { %v3815_v3 = vpop.xlane.xlu0 %1525 }
 0x38e   :  { %v1620_v25 = vpop.xlane.xlu1 %1619 }
 0x38f   :  { %v1694_v31 = vsub.f32 %v3811_v40, %v1620_v25  ;;  %v1858_v25 = vsub.s32 %v3881_v61, %v3789_v43 }
 0x390   :  { %v3817_v44 = vpop.xlane.xlu0 %1621 }
 0x391   :  { %v1711_v30 = vadd.f32 %v3784_v52, %v1694_v31 }
 0x392   :  { %v3819_v59 = vpop.xlane.xlu1 %1573 }
 0x393   :  { %v1646_v38 = vsub.f32 %v3815_v3, %v3819_v59  ;;  %v1695_v55 = vsub.f32 %v3819_v59, %v3817_v44  ;;  %v1645_v3 = vsub.f32 %v3813_v9, %v3811_v40  ;;  %v1675_v44 = vmax.f32 %v1659_v49, 0.0 }
 0x394   :  { %v3821_v16 = vpop.xlane.xlu0 %1575  ;;  %v1710_v59 = vadd.f32 %v3784_v52, %v1693_v7  ;;  %v1727_v49 = vmax.f32 %v1711_v30, 0.0 }
 0x395   :  { %v1663_v35 = vadd.f32 %v3782_v20, %v1646_v38  ;;  %v1712_v23 = vadd.f32 %v3784_v52, %v1695_v55  ;;  %v1740_v8 = vadd.f32 %v1724_v27, %v1675_v44  ;;  %v1662_v39 = vadd.f32 %v3782_v20, %v1645_v3 }
 0x396   :  { %v3823_v32 = vpop.xlane.xlu1 %1527  ;;  %v1726_v21 = vmax.f32 %v1710_v59, 0.0 }
 0x397   :  { %v1647_v2 = vsub.f32 %v3823_v32, %v3821_v16  ;;  %v1679_v7 = vmax.f32 %v1663_v35, 0.0  ;;  %v1728_v31 = vmax.f32 %v1712_v23, 0.0  ;;  %v1678_v19 = vmax.f32 %v1662_v39, 0.0 }
 0x398   :  { %v3825_v47 = vpop.xlane.xlu0 %1529  ;;  %v1742_v3 = vadd.f32 %v1726_v21, %v1677_v36 }
 0x399   :  { %v1664_v38 = vadd.f32 %v3782_v20, %v1647_v2  ;;  %v1744_v48 = vadd.f32 %v1728_v31, %v1679_v7 }
 0x39a   :  { %v3827_v56 = vpop.xlane.xlu1 %1623  ;;  %v1817_v12 = vrot.slane %v1742_v3, %v1816_v5 }
 0x39b   :  { %v1696_v58 = vsub.f32 %v3821_v16, %v3827_v56  ;;  %v1680_v51 = vmax.f32 %v1664_v38, 0.0 }
 0x39c   :  { %v3829_v28 = vpop.xlane.xlu0 %1625 }
 0x39e   :  { %v3840_v29 = vpop.xlane.xlu1 %1577 }
 0x39f   :  { %v1648_v40 = vsub.f32 %v3825_v47, %v3840_v29  ;;  %v1697_v9 = vsub.f32 %v3840_v29, %v3829_v28  ;;  %v1713_v47 = vadd.f32 %v3784_v52, %v1696_v58  ;;  %v1743_v58 = vadd.f32 %v1727_v49, %v1678_v19 }
 0x3a1   :  { %v1665_v16 = vadd.f32 %v3782_v20, %v1648_v40  ;;  %v1714_v32 = vadd.f32 %v3784_v52, %v1697_v9  ;;  %v1729_v44 = vmax.f32 %v1713_v47, 0.0  ;;  %v1862_v40 = vadd.s32 4294967184, %v2615_v0 }
 0x3a2   :  { %v3874_v6 = vpop.xlane.xlu1 %1531 }
 0x3a3   :  { %v1745_v2 = vadd.f32 %v1729_v44, %v1680_v51  ;;  %v1865_v42 = vsub.s32 %v1862_v40, %v3789_v43 }
 0x3bb   :  { %v3848_v24 = vpop.xlane.xlu0 %1579 }
 0x3bc   :  { %v1649_v28 = vsub.f32 %v3874_v6, %v3848_v24  ;;  %v1803_v6 = vrot.slane %v1740_v8, %v1802_v14 }
 0x3be   :  { %v1666_v59 = vadd.f32 %v3782_v20, %v1649_v28 }
 0x3bf   :  { %v1534_v63 = vpop.xlane.xlu0 %1533 }
 0x3c4   :  { %v1628_v15 = vpop.xlane.xlu1 %1627 }
 0x3c5   :  { %v1698_v56 = vsub.f32 %v3848_v24, %v1628_v15  ;;  %v1796_v24 = vrot.slane %v1739_v11, %v1795_v37  ;;  %v1681_v37 = vmax.f32 %v1665_v16, 0.0  ;;  %v1730_v11 = vmax.f32 %v1714_v32, 0.0 }
 0x3c6   :  { %v1630_v57 = vpop.xlane.xlu0 %1629 }
 0x3c7   :  { %v1798_v53 = vsel %vm1797_vm7, %v1796_v24, %v3805_v1  ;;  %v1746_v36 = vadd.f32 %v1730_v11, %v1681_v37  ;;  %v1869_v1 = vadd.s32 4294967176, %v2615_v0  ;;  %v1838_v0 = vrot.slane %v1745_v2, %v1837_v41 }
 0x3c8   :  { %v1582_v33 = vpop.xlane.xlu1 %1581  ;;  %v1805_v8 = vsel %vm1804_vm12, %v1803_v6, %v1798_v53 }
 0x3c9   :  { %v1650_v26 = vsub.f32 %v1534_v63, %v1582_v33  ;;  %v1699_v45 = vsub.f32 %v1582_v33, %v1630_v57  ;;  %v1715_v63 = vadd.f32 %v3784_v52, %v1698_v56  ;;  %v1682_v56 = vmax.f32 %v1666_v59, 0.0 }
 0x3ca   :  { %v1584_v29 = vpop.xlane.xlu0 %1583  ;;  %v1812_v33 = vsel %vm1811_vm4, %v1810_v18, %v1805_v8  ;;  %v1845_v10 = vrot.slane %v1746_v36, %v1844_v62  ;;  %v1872_v60 = vsub.s32 %v1869_v1, %v3789_v43 }
 0x3cb   :  { %v1667_v55 = vadd.f32 %v3782_v20, %v1650_v26  ;;  %v1716_v27 = vadd.f32 %v3784_v52, %v1699_v45  ;;  %v1731_v14 = vmax.f32 %v1715_v63, 0.0  ;;  %v1824_v26 = vrot.slane %v1743_v58, %v1823_v54 }
 0x3cc   :  { %v1536_v17 = vpop.xlane.xlu1 %1535  ;;  %v1831_v45 = vrot.slane %v1744_v48, %v1830_v46  ;;  %v1819_v31 = vsel %vm1818_vm1, %v1817_v12, %v1812_v33 }
 0x3cd   :  { %v1651_v15 = vsub.f32 %v1536_v17, %v1584_v29  ;;  %v1683_v57 = vmax.f32 %v1667_v55, 0.0  ;;  %v1732_v35 = vmax.f32 %v1716_v27, 0.0  ;;  %v1747_v21 = vadd.f32 %v1731_v14, %v1682_v56 }
 0x3ce   :  { %v1538_v30 = vpop.xlane.xlu0 %1537  ;;  %v1826_v32 = vsel %vm1825_vm5, %v1824_v26, %v1819_v31 }
 0x3cf   :  { %v1668_v50 = vadd.f32 %v3782_v20, %v1651_v15  ;;  %v1748_v34 = vadd.f32 %v1732_v35, %v1683_v57  ;;  %v1852_v38 = vrot.slane %v1747_v21, %v1851_v4  ;;  %v1833_v41 = vsel %vm1832_vm0, %v1831_v45, %v1826_v32 }
 0x3d0   :  { %v1632_v23 = vpop.xlane.xlu1 %1631 }
 0x3d1   :  { %v1700_v9 = vsub.f32 %v1584_v29, %v1632_v23  ;;  %v1684_v47 = vmax.f32 %v1668_v50, 0.0  ;;  %v1859_v13 = vrot.slane %v1748_v34, %v1858_v25 }
 0x3d2   :  { %v1634_v5 = vpop.xlane.xlu0 %1633 }
 0x3d3   :  { %v1717_v39 = vadd.f32 %v3784_v52, %v1700_v9 }
 0x3d4   :  { %v1586_v49 = vpop.xlane.xlu1 %1585 }
 0x3d5   :  { %v1733_v28 = vmax.f32 %v1717_v39, 0.0  ;;  %v1652_v29 = vsub.f32 %v1538_v30, %v1586_v49  ;;  %v1701_v7 = vsub.f32 %v1586_v49, %v1634_v5 }
 0x3d7   :  { %v1749_v54 = vadd.f32 %v1733_v28, %v1684_v47  ;;  %v1669_v46 = vadd.f32 %v3782_v20, %v1652_v29  ;;  %v1718_v16 = vadd.f32 %v3784_v52, %v1701_v7  ;;  %v1840_v20 = vsel %vm1839_vm6, %v1838_v0, %v1833_v41 }
 0x3d8   :  { %v1847_v27 = vsel %vm1846_vm3, %v1845_v10, %v1840_v20 }
 0x3d9   :  { %v1685_v62 = vmax.f32 %v1669_v46, 0.0  ;;  %v1734_v63 = vmax.f32 %v1718_v16, 0.0  ;;  %v1866_v52 = vrot.slane %v1749_v54, %v1865_v42  ;;  %v1854_v22 = vsel %vm1853_vm9, %v1852_v38, %v1847_v27 }
 0x3da   :  { %v1861_v4 = vsel %vm1860_vm14, %v1859_v13, %v1854_v22 }
 0x3db   :  { %v1750_v55 = vadd.f32 %v1734_v63, %v1685_v62  ;;  %v1868_v24 = vsel %vm1867_vm13, %v1866_v52, %v1861_v4 }
 0x3dd   :  { %v1873_v17 = vrot.slane %v1750_v55, %v1872_v60 }
 0x3df   :  { %v1875_v43 = vsel %vm1874_vm15, %v1873_v17, %v1868_v24 }
 0x3e0   :  { %1877 = vst [vmem:[#allocation5] sm:$0x1] %v1875_v43 }
 0x3e1   :  { %2083 = shalt.err (!%p2080_p9)
}
 0x3e2   :  { %s2084_s11 = scalar_lea.hbm %s3990_s3, 16 }
 0x3e3   :  { %p2085_p10 = scmp.ne.s32.totalorder %s3990_s3, %s2084_s11  ;;  %p2088_p11 = scmp.lt.u32.totalorder %s2084_s11, %s3990_s3 }
 0x3e5   :  { %p2090_p12 = pnand %p2088_p11, %p2085_p10 }
 0x3e7   :  { %2093 = shalt.err (!%p2090_p12)
}
 0x3e8   :  { %1887 = dma.vmem_to_hbm [thread:$0]  %s1885_s6, 16, %s3990_s3, [#allocation3]  }
 0x3e9   :  { %2096 = dma.done.wait [#allocation3], 16  }
 0x3ea   :  { %2097 = vsyncadd [#allocation3], 4294967280 }
 0x3eb   :  { %1891 = vsyncpa [#allocation3], 1 }
 0x3ec   :  { %1892 = vsyncpa [#allocation4], 1 }

</bundles_post_ra>
